<compile_context>
chip_gen: v7x
topology: tpu7x:2x2x1
jax: 0.10.0
libtpu: 0.0.40
codegen_flags: <defaults>
</compile_context>

<pallas_src>
import jax
import jax.numpy as jnp
from jax.experimental import pallas as pl
from jax.experimental.pallas import tpu as pltpu

IN_CHANNELS = 4
H1, H2, H3 = 64, 128, 1024
H1P = 128                     # layer-1 width zero-padded to one full lane tile

# Per-(point,batch)-row VMEM cost per stream (src or tgt), used to size rows:
#   x block, lane-padded (rows,4)->(rows,128) f32, double-buffered : 1024 B
#   h1 f32 + bf16 copy                                             :  768 B
#   h2 f32 + bf16 copy                                             :  768 B
#   h3 f32 (dominant term)                                         : 4096 B
#   compiler temporaries / slack                                   : ~1536 B
_BYTES_PER_STREAM_ROW = 8 * 1024
_FIXED_VMEM = 4 << 20         # weights (double-buffered), outputs, scratch
_MIN_STEP_ROWS = 2048         # rows/stream/step below which step overhead dominates


def _cdiv(a, b):
    return -(-a // b)


def _round_up(a, b):
    return _cdiv(a, b) * b


def make_embed_kernel(tb, pc):
    """Grid = (batch blocks, point chunks). Each step embeds `tb` batch
    elements x `pc` points of BOTH src and tgt; the outputs are VMEM-resident
    running-max accumulators across the point-chunk axis."""

    def kernel(xs_ref, xt_ref, w1_ref, b1_ref, w2_ref, b2_ref, w3_ref, b3_ref,
               os_ref, ot_ref):
        c = pl.program_id(1)
        w1 = w1_ref[...]                      # (4, 128)  f32
        b1 = b1_ref[...]                      # (1, 128)  f32
        w2 = w2_ref[...]                      # (128, 128) bf16
        b2 = b2_ref[...]                      # (1, 128)  f32
        w3 = w3_ref[...]                      # (128, 1024) bf16

        def mlp_pool(x_ref):
            # (tb, pc, 4) -> (tb*pc, 4): layout-free since pc % 8 == 0.
            x = x_ref[...].reshape(tb * pc, IN_CHANNELS)
            # Layer 1 on the VPU (K=4 would waste the MXU); exact f32.
            h1 = x[:, 0:1] * w1[0:1, :] + b1
            for k in range(1, IN_CHANNELS):
                h1 = h1 + x[:, k:k + 1] * w1[k:k + 1, :]
            h1 = jnp.maximum(h1, 0.0)                         # (rows, 128) f32
            # Layers 2-3 on the MXU: bf16 operands, f32 accumulation; bias +
            # ReLU stay on the f32 accumulator.
            h2 = jnp.maximum(
                jnp.dot(h1.astype(jnp.bfloat16), w2,
                        preferred_element_type=jnp.float32) + b2, 0.0)
            h3 = jnp.dot(h2.astype(jnp.bfloat16), w3,
                         preferred_element_type=jnp.float32)   # (rows, 1024)
            # Vectorized pooling of this point chunk: one sublane reduction
            # and one lane-dense (tb, 1024) value.
            return jnp.max(h3.reshape(tb, pc, H3), axis=1)

        pooled_s = mlp_pool(xs_ref)
        pooled_t = mlp_pool(xt_ref)

        @pl.when(c == 0)
        def _():
            os_ref[...] = pooled_s
            ot_ref[...] = pooled_t

        @pl.when(c > 0)
        def _():
            os_ref[...] = jnp.maximum(os_ref[...], pooled_s)
            ot_ref[...] = jnp.maximum(ot_ref[...], pooled_t)

        # b3 is constant across points: add once, after the final chunk.
        @pl.when(c == pl.num_programs(1) - 1)
        def _():
            b3 = b3_ref[...]
            os_ref[...] = os_ref[...] + b3
            ot_ref[...] = ot_ref[...] + b3

    return kernel


def _vmem_budget():
    """Per-generation VMEM budget (sizing) and scoped limit (compiler flag)."""
    try:
        phys = int(pltpu.get_tpu_info().vmem_capacity_bytes)
    except Exception:
        phys = 64 << 20                        # conservative fallback (v7x)
    phys = max(32 << 20, min(phys, 128 << 20))
    budget = min(int(phys * 0.70), 100 << 20)  # v5e/v6e ~90 MiB, v7x ~45 MiB
    limit = int(max(32 << 20, min(phys, 100 << 20)))
    return budget, limit


def _plan_tiling(B, N, budget):
    """Pick (tb batch-elems, pc points) per grid step so the per-step matmul
    M dimension (2*tb*pc rows: src + tgt) is as large as VMEM allows."""
    n8 = _round_up(N, 8)
    cap = max(8, (budget - _FIXED_VMEM) // (2 * _BYTES_PER_STREAM_ROW))
    if n8 <= cap:
        pc = n8
        tb = max(1, min(B, cap // pc))
        if B % tb:
            # Prefer a tb that divides B (no padded batch elements) as long
            # as it stays within 2x of the VMEM-derived tile.
            for t in range(tb - 1, 0, -1):
                if B % t == 0 and 2 * t >= tb:
                    tb = t
                    break
        nblk = _cdiv(B, tb)
        # v7x has 2 TensorCores: give them >= 2 parallel batch steps, but only
        # if each step still has enough rows to stay MXU-bound.
        if nblk == 1 and tb > 1 and (tb // 2) * pc >= _MIN_STEP_ROWS:
            tb = _cdiv(tb, 2)
            nblk = _cdiv(B, tb)
        nchunk, n_pad = 1, pc
    else:
        # N alone exceeds the per-step row budget: chunk points inside the
        # grid with a running max in the VMEM-resident output block.
        tb = 1
        nchunk = _cdiv(n8, cap)
        pc = _round_up(_cdiv(n8, nchunk), 8)
        n_pad = pc * nchunk
        nblk = B
    return tb, pc, nblk, nchunk, n_pad


def embed_pair_pallas(src, tgt, params):
    """src, tgt: (B, N, D) f32 -> (emb_src, emb_tgt), each (B, 1024) f32."""
    w1, b1, w2, b2, w3, b3 = params
    B, N, D = src.shape
    assert D == IN_CHANNELS and tgt.shape == src.shape

    budget, vmem_limit = _vmem_budget()
    tb, pc, nblk, nchunk, n_pad = _plan_tiling(B, N, budget)
    b_pad = nblk * tb

    # TODO(synk): ragged point tails could be masked in-kernel with a
    # broadcasted_iota compare instead of this wrapper-side pad (no-op at the
    # shapes used here; edge-replication keeps the max-pool exact).
    def prep(x):
        if n_pad != N:
            x = jnp.pad(x, ((0, 0), (0, n_pad - N), (0, 0)), mode="edge")
        if b_pad != B:
            x = jnp.pad(x, ((0, b_pad - B), (0, 0), (0, 0)))
        return x

    src_p, tgt_p = prep(src), prep(tgt)

    # Weight prep (tiny): H1 zero-padded 64 -> 128 for lane density (exact),
    # w2/w3 in bf16 for the MXU (f32 accumulation in-kernel).
    w1p = jnp.zeros((D, H1P), jnp.float32).at[:, :H1].set(w1)
    b1p = jnp.zeros((1, H1P), jnp.float32).at[:, :H1].set(b1.reshape(1, H1))
    w2p = (jnp.zeros((H1P, H2), jnp.float32).at[:H1, :].set(w2)
           .astype(jnp.bfloat16))
    b2p = b2.reshape(1, H2)
    w3p = w3.astype(jnp.bfloat16)
    b3p = b3.reshape(1, H3)

    # Grid-invariant weight/bias blocks: constant index_map, so they are not
    # re-DMA'd across grid steps.
    # TODO(synk): pipeline_mode=pl.Buffered(1) would single-buffer these and
    # free ~300 KiB of VMEM headroom on v7x.
    def wspec(r, c):
        return pl.BlockSpec((r, c), lambda i, j: (0, 0))

    x_spec = pl.BlockSpec((tb, pc, D), lambda i, j: (i, j, 0))
    o_spec = pl.BlockSpec((pl.Squeezed(), tb, H3), lambda i, j: (i, 0, 0))
    out_sds = jax.ShapeDtypeStruct((nblk, tb, H3), jnp.float32)

    emb_s, emb_t = pl.pallas_call(
        make_embed_kernel(tb, pc),
        out_shape=(out_sds, out_sds),
        grid_spec=pltpu.PrefetchScalarGridSpec(
            num_scalar_prefetch=0,
            grid=(nblk, nchunk),
            in_specs=[
                x_spec, x_spec,
                wspec(D, H1P), wspec(1, H1P),
                wspec(H1P, H2), wspec(1, H2),
                wspec(H2, H3), wspec(1, H3),
            ],
            out_specs=[o_spec, o_spec],
        ),
        compiler_params=pltpu.CompilerParams(
            dimension_semantics=("parallel", "arbitrary"),
            vmem_limit_bytes=vmem_limit),
    )(src_p, tgt_p, w1p, b1p, w2p, b2p, w3p, b3p)

    emb_s = emb_s.reshape(b_pad, H3)[:B]
    emb_t = emb_t.reshape(b_pad, H3)[:B]
    return emb_s, emb_t


def state_embed_forward(src, tgt, params):
    """src, tgt: (B, N, D). Returns state of shape (B, 1, 2*1024)."""
    # TODO(synk): the BENCHMARK fast path (tgt already embedded) of the
    # reference module is host-side control flow and is not modeled here.
    B = src.shape[0]
    emb_src, emb_tgt = embed_pair_pallas(src, tgt, params)
    # state[:, 0::2] = emb_src ; state[:, 1::2] = emb_tgt ; then transpose(1,2)
    state = jnp.stack([emb_src, emb_tgt], axis=-1).reshape(B, 1, 2 * H3)
    return state


def init_params(key):
    """Deterministic synthetic weights (Conv1d (Cout,Cin,1) -> (Cin,Cout))."""
    ks = jax.random.split(key, 6)

    def u(k, shape, fan_in):
        bound = 1.0 / jnp.sqrt(fan_in)
        return jax.random.uniform(k, shape, jnp.float32, -bound, bound)

    w1 = u(ks[0], (IN_CHANNELS, H1), IN_CHANNELS)
    b1 = u(ks[1], (1, H1), IN_CHANNELS)
    w2 = u(ks[2], (H1, H2), H1)
    b2 = u(ks[3], (1, H2), H1)
    w3 = u(ks[4], (H2, H3), H2)
    b3 = u(ks[5], (1, H3), H2)
    return (w1, b1, w2, b2, w3, b3)


def _embed_ref(x, w1, b1, w2, b2, w3, b3):
    h1 = jnp.maximum(x @ w1 + b1, 0.0)
    h2 = jnp.maximum(h1 @ w2 + b2, 0.0)
    h3 = h2 @ w3 + b3
    return jnp.max(h3, axis=1)


if __name__ == "__main__":
    key = jax.random.PRNGKey(0)
    k_src, k_tgt, k_par = jax.random.split(key, 3)

    B, N, D = 2, 16, IN_CHANNELS
    src = jax.random.normal(k_src, (B, N, D), jnp.float32)
    tgt = jax.random.normal(k_tgt, (B, N, D), jnp.float32)
    params = init_params(k_par)

    state = state_embed_forward(src, tgt, params)
    state = jax.block_until_ready(state)
    assert state.shape == (B, 1, 2 * H3), state.shape

    # Pure-JAX f32 reference; layers 2-3 use bf16 weights in the kernel, so
    # the tolerance is loosened accordingly (layer 1 is exact f32 on the VPU).
    es = _embed_ref(src, *params)
    et = _embed_ref(tgt, *params)
    ref = jnp.stack([es, et], axis=-1).reshape(B, 1, 2 * H3)
    assert jnp.allclose(state, ref, atol=2e-2, rtol=2e-2), (
        float(jnp.max(jnp.abs(state - ref))))

    print("KERNEL_OK")
</pallas_src>

<mosaic_0001>
module attributes {stable_mosaic.version = 11 : i64} {
  func.func @kernel(%arg0: i32, %arg1: i32, %arg2: memref<2x16x4xf32, #tpu.memory_space<vmem>>, %arg3: memref<2x16x4xf32, #tpu.memory_space<vmem>>, %arg4: memref<4x128xf32, #tpu.memory_space<vmem>>, %arg5: memref<1x128xf32, #tpu.memory_space<vmem>>, %arg6: memref<128x128xbf16, #tpu.memory_space<vmem>>, %arg7: memref<1x128xf32, #tpu.memory_space<vmem>>, %arg8: memref<128x1024xbf16, #tpu.memory_space<vmem>>, %arg9: memref<1x1024xf32, #tpu.memory_space<vmem>>, %arg10: memref<1x2x1024xf32, #tpu.memory_space<vmem>>, %arg11: memref<1x2x1024xf32, #tpu.memory_space<vmem>>) attributes {dimension_semantics = [#tpu.dimension_semantics<parallel>, #tpu.dimension_semantics<arbitrary>], iteration_bounds = array<i64: 1, 1>, scalar_prefetch = 0 : i64, scratch_operands = 0 : i64, tpu.core_type = #tpu.core_type<tc>, window_params = [{transform_indices = @transform_0, window_bounds = array<i64: 2, 16, 4>}, {transform_indices = @transform_1, window_bounds = array<i64: 2, 16, 4>}, {pipeline_mode = #tpu.pipeline_mode<synchronous>, transform_indices = @transform_2, window_bounds = array<i64: 4, 128>}, {pipeline_mode = #tpu.pipeline_mode<synchronous>, transform_indices = @transform_3, window_bounds = array<i64: 1, 128>}, {pipeline_mode = #tpu.pipeline_mode<synchronous>, transform_indices = @transform_4, window_bounds = array<i64: 128, 128>}, {pipeline_mode = #tpu.pipeline_mode<synchronous>, transform_indices = @transform_5, window_bounds = array<i64: 1, 128>}, {pipeline_mode = #tpu.pipeline_mode<synchronous>, transform_indices = @transform_6, window_bounds = array<i64: 128, 1024>}, {pipeline_mode = #tpu.pipeline_mode<synchronous>, transform_indices = @transform_7, window_bounds = array<i64: 1, 1024>}, {transform_indices = @transform_8, window_bounds = array<i64: 1, 2, 1024>}, {transform_indices = @transform_9, window_bounds = array<i64: 1, 2, 1024>}]} {
    %c0 = arith.constant 0 : index
    %c0_0 = arith.constant 0 : index
    %0 = vector.load %arg4[%c0, %c0_0] : memref<4x128xf32, #tpu.memory_space<vmem>>, vector<4x128xf32>
    %c0_1 = arith.constant 0 : index
    %c0_2 = arith.constant 0 : index
    %1 = vector.load %arg5[%c0_1, %c0_2] : memref<1x128xf32, #tpu.memory_space<vmem>>, vector<1x128xf32>
    %c0_3 = arith.constant 0 : index
    %c0_4 = arith.constant 0 : index
    %2 = vector.load %arg6[%c0_3, %c0_4] : memref<128x128xbf16, #tpu.memory_space<vmem>>, vector<128x128xbf16>
    %c0_5 = arith.constant 0 : index
    %c0_6 = arith.constant 0 : index
    %3 = vector.load %arg7[%c0_5, %c0_6] : memref<1x128xf32, #tpu.memory_space<vmem>>, vector<1x128xf32>
    %c0_7 = arith.constant 0 : index
    %c0_8 = arith.constant 0 : index
    %4 = vector.load %arg8[%c0_7, %c0_8] : memref<128x1024xbf16, #tpu.memory_space<vmem>>, vector<128x1024xbf16>
    %c0_9 = arith.constant 0 : index
    %c0_10 = arith.constant 0 : index
    %c0_11 = arith.constant 0 : index
    %5 = vector.load %arg2[%c0_9, %c0_10, %c0_11] : memref<2x16x4xf32, #tpu.memory_space<vmem>>, vector<2x16x4xf32>
    %6 = vector.shape_cast %5 : vector<2x16x4xf32> to vector<32x4xf32>
    %7 = vector.extract_strided_slice %6 {offsets = [0, 0], sizes = [32, 1], strides = [1, 1]} : vector<32x4xf32> to vector<32x1xf32>
    %8 = vector.extract_strided_slice %0 {offsets = [0, 0], sizes = [1, 128], strides = [1, 1]} : vector<4x128xf32> to vector<1x128xf32>
    %9 = vector.broadcast %7 : vector<32x1xf32> to vector<32x128xf32>
    %10 = vector.broadcast %8 : vector<1x128xf32> to vector<32x128xf32>
    %11 = arith.mulf %9, %10 : vector<32x128xf32>
    %12 = vector.broadcast %1 : vector<1x128xf32> to vector<32x128xf32>
    %13 = arith.addf %11, %12 : vector<32x128xf32>
    %14 = vector.extract_strided_slice %6 {offsets = [0, 1], sizes = [32, 1], strides = [1, 1]} : vector<32x4xf32> to vector<32x1xf32>
    %15 = vector.extract_strided_slice %0 {offsets = [1, 0], sizes = [1, 128], strides = [1, 1]} : vector<4x128xf32> to vector<1x128xf32>
    %16 = vector.broadcast %14 : vector<32x1xf32> to vector<32x128xf32>
    %17 = vector.broadcast %15 : vector<1x128xf32> to vector<32x128xf32>
    %18 = arith.mulf %16, %17 : vector<32x128xf32>
    %19 = arith.addf %13, %18 : vector<32x128xf32>
    %20 = vector.extract_strided_slice %6 {offsets = [0, 2], sizes = [32, 1], strides = [1, 1]} : vector<32x4xf32> to vector<32x1xf32>
    %21 = vector.extract_strided_slice %0 {offsets = [2, 0], sizes = [1, 128], strides = [1, 1]} : vector<4x128xf32> to vector<1x128xf32>
    %22 = vector.broadcast %20 : vector<32x1xf32> to vector<32x128xf32>
    %23 = vector.broadcast %21 : vector<1x128xf32> to vector<32x128xf32>
    %24 = arith.mulf %22, %23 : vector<32x128xf32>
    %25 = arith.addf %19, %24 : vector<32x128xf32>
    %26 = vector.extract_strided_slice %6 {offsets = [0, 3], sizes = [32, 1], strides = [1, 1]} : vector<32x4xf32> to vector<32x1xf32>
    %27 = vector.extract_strided_slice %0 {offsets = [3, 0], sizes = [1, 128], strides = [1, 1]} : vector<4x128xf32> to vector<1x128xf32>
    %28 = vector.broadcast %26 : vector<32x1xf32> to vector<32x128xf32>
    %29 = vector.broadcast %27 : vector<1x128xf32> to vector<32x128xf32>
    %30 = arith.mulf %28, %29 : vector<32x128xf32>
    %31 = arith.addf %25, %30 : vector<32x128xf32>
    %cst = arith.constant 0.000000e+00 : f32
    %32 = vector.broadcast %cst : f32 to vector<32x128xf32>
    %33 = arith.maximumf %31, %32 : vector<32x128xf32>
    %34 = arith.truncf %33 : vector<32x128xf32> to vector<32x128xbf16>
    %cst_12 = arith.constant dense<0.000000e+00> : vector<32x128xf32>
    %35 = tpu.matmul %34, %2, %cst_12 {dimension_numbers = #tpu.dot_dimension_numbers<[1], [0], [0], [1], [0, 0, 1, 1], [], []>} : vector<32x128xbf16>, vector<128x128xbf16>, vector<32x128xf32> -> vector<32x128xf32>
    %36 = vector.broadcast %3 : vector<1x128xf32> to vector<32x128xf32>
    %37 = arith.addf %35, %36 : vector<32x128xf32>
    %cst_13 = arith.constant 0.000000e+00 : f32
    %38 = vector.broadcast %cst_13 : f32 to vector<32x128xf32>
    %39 = arith.maximumf %37, %38 : vector<32x128xf32>
    %40 = arith.truncf %39 : vector<32x128xf32> to vector<32x128xbf16>
    %cst_14 = arith.constant dense<0.000000e+00> : vector<32x1024xf32>
    %41 = tpu.matmul %40, %4, %cst_14 {dimension_numbers = #tpu.dot_dimension_numbers<[1], [0], [0], [1], [0, 0, 1, 1], [], []>} : vector<32x128xbf16>, vector<128x1024xbf16>, vector<32x1024xf32> -> vector<32x1024xf32>
    %42 = vector.shape_cast %41 : vector<32x1024xf32> to vector<2x16x1024xf32>
    %cst_15 = arith.constant dense<0xFF800000> : vector<2x1024xf32>
    %43 = vector.multi_reduction <maximumf>, %42, %cst_15 [1] : vector<2x16x1024xf32> to vector<2x1024xf32>
    %c0_16 = arith.constant 0 : index
    %c0_17 = arith.constant 0 : index
    %c0_18 = arith.constant 0 : index
    %44 = vector.load %arg3[%c0_16, %c0_17, %c0_18] : memref<2x16x4xf32, #tpu.memory_space<vmem>>, vector<2x16x4xf32>
    %45 = vector.shape_cast %44 : vector<2x16x4xf32> to vector<32x4xf32>
    %46 = vector.extract_strided_slice %45 {offsets = [0, 0], sizes = [32, 1], strides = [1, 1]} : vector<32x4xf32> to vector<32x1xf32>
    %47 = vector.extract_strided_slice %0 {offsets = [0, 0], sizes = [1, 128], strides = [1, 1]} : vector<4x128xf32> to vector<1x128xf32>
    %48 = vector.broadcast %46 : vector<32x1xf32> to vector<32x128xf32>
    %49 = vector.broadcast %47 : vector<1x128xf32> to vector<32x128xf32>
    %50 = arith.mulf %48, %49 : vector<32x128xf32>
    %51 = vector.broadcast %1 : vector<1x128xf32> to vector<32x128xf32>
    %52 = arith.addf %50, %51 : vector<32x128xf32>
    %53 = vector.extract_strided_slice %45 {offsets = [0, 1], sizes = [32, 1], strides = [1, 1]} : vector<32x4xf32> to vector<32x1xf32>
    %54 = vector.extract_strided_slice %0 {offsets = [1, 0], sizes = [1, 128], strides = [1, 1]} : vector<4x128xf32> to vector<1x128xf32>
    %55 = vector.broadcast %53 : vector<32x1xf32> to vector<32x128xf32>
    %56 = vector.broadcast %54 : vector<1x128xf32> to vector<32x128xf32>
    %57 = arith.mulf %55, %56 : vector<32x128xf32>
    %58 = arith.addf %52, %57 : vector<32x128xf32>
    %59 = vector.extract_strided_slice %45 {offsets = [0, 2], sizes = [32, 1], strides = [1, 1]} : vector<32x4xf32> to vector<32x1xf32>
    %60 = vector.extract_strided_slice %0 {offsets = [2, 0], sizes = [1, 128], strides = [1, 1]} : vector<4x128xf32> to vector<1x128xf32>
    %61 = vector.broadcast %59 : vector<32x1xf32> to vector<32x128xf32>
    %62 = vector.broadcast %60 : vector<1x128xf32> to vector<32x128xf32>
    %63 = arith.mulf %61, %62 : vector<32x128xf32>
    %64 = arith.addf %58, %63 : vector<32x128xf32>
    %65 = vector.extract_strided_slice %45 {offsets = [0, 3], sizes = [32, 1], strides = [1, 1]} : vector<32x4xf32> to vector<32x1xf32>
    %66 = vector.extract_strided_slice %0 {offsets = [3, 0], sizes = [1, 128], strides = [1, 1]} : vector<4x128xf32> to vector<1x128xf32>
    %67 = vector.broadcast %65 : vector<32x1xf32> to vector<32x128xf32>
    %68 = vector.broadcast %66 : vector<1x128xf32> to vector<32x128xf32>
    %69 = arith.mulf %67, %68 : vector<32x128xf32>
    %70 = arith.addf %64, %69 : vector<32x128xf32>
    %cst_19 = arith.constant 0.000000e+00 : f32
    %71 = vector.broadcast %cst_19 : f32 to vector<32x128xf32>
    %72 = arith.maximumf %70, %71 : vector<32x128xf32>
    %73 = arith.truncf %72 : vector<32x128xf32> to vector<32x128xbf16>
    %cst_20 = arith.constant dense<0.000000e+00> : vector<32x128xf32>
    %74 = tpu.matmul %73, %2, %cst_20 {dimension_numbers = #tpu.dot_dimension_numbers<[1], [0], [0], [1], [0, 0, 1, 1], [], []>} : vector<32x128xbf16>, vector<128x128xbf16>, vector<32x128xf32> -> vector<32x128xf32>
    %75 = vector.broadcast %3 : vector<1x128xf32> to vector<32x128xf32>
    %76 = arith.addf %74, %75 : vector<32x128xf32>
    %cst_21 = arith.constant 0.000000e+00 : f32
    %77 = vector.broadcast %cst_21 : f32 to vector<32x128xf32>
    %78 = arith.maximumf %76, %77 : vector<32x128xf32>
    %79 = arith.truncf %78 : vector<32x128xf32> to vector<32x128xbf16>
    %cst_22 = arith.constant dense<0.000000e+00> : vector<32x1024xf32>
    %80 = tpu.matmul %79, %4, %cst_22 {dimension_numbers = #tpu.dot_dimension_numbers<[1], [0], [0], [1], [0, 0, 1, 1], [], []>} : vector<32x128xbf16>, vector<128x1024xbf16>, vector<32x1024xf32> -> vector<32x1024xf32>
    %81 = vector.shape_cast %80 : vector<32x1024xf32> to vector<2x16x1024xf32>
    %cst_23 = arith.constant dense<0xFF800000> : vector<2x1024xf32>
    %82 = vector.multi_reduction <maximumf>, %81, %cst_23 [1] : vector<2x16x1024xf32> to vector<2x1024xf32>
    %c0_i32 = arith.constant 0 : i32
    %83 = arith.cmpi eq, %arg1, %c0_i32 : i32
    %84 = arith.extui %83 : i1 to i32
    %c0_i32_24 = arith.constant 0 : i32
    %85 = arith.cmpi ne, %84, %c0_i32_24 : i32
    scf.if %85 {
      %c0_29 = arith.constant 0 : index
      %c0_30 = arith.constant 0 : index
      %c0_31 = arith.constant 0 : index
      %92 = vector.load %arg10[%c0_29, %c0_30, %c0_31] : memref<1x2x1024xf32, #tpu.memory_space<vmem>>, vector<1x2x1024xf32>
      %93 = vector.shape_cast %92 : vector<1x2x1024xf32> to vector<2x1024xf32>
      %94 = vector.shape_cast %43 : vector<2x1024xf32> to vector<1x2x1024xf32>
      tpu.vector_store %arg10[%c0_29, %c0_30, %c0_31], %94 {strides = array<i32>} : memref<1x2x1024xf32, #tpu.memory_space<vmem>>, vector<1x2x1024xf32>,
      %c0_32 = arith.constant 0 : index
      %c0_33 = arith.constant 0 : index
      %c0_34 = arith.constant 0 : index
      %95 = vector.load %arg11[%c0_32, %c0_33, %c0_34] : memref<1x2x1024xf32, #tpu.memory_space<vmem>>, vector<1x2x1024xf32>
      %96 = vector.shape_cast %95 : vector<1x2x1024xf32> to vector<2x1024xf32>
      %97 = vector.shape_cast %82 : vector<2x1024xf32> to vector<1x2x1024xf32>
      tpu.vector_store %arg11[%c0_32, %c0_33, %c0_34], %97 {strides = array<i32>} : memref<1x2x1024xf32, #tpu.memory_space<vmem>>, vector<1x2x1024xf32>,
    } else {
    }
    %c0_i32_25 = arith.constant 0 : i32
    %86 = arith.cmpi sgt, %arg1, %c0_i32_25 : i32
    %87 = arith.extui %86 : i1 to i32
    %c0_i32_26 = arith.constant 0 : i32
    %88 = arith.cmpi ne, %87, %c0_i32_26 : i32
    scf.if %88 {
      %c0_29 = arith.constant 0 : index
      %c0_30 = arith.constant 0 : index
      %c0_31 = arith.constant 0 : index
      %92 = vector.load %arg10[%c0_29, %c0_30, %c0_31] : memref<1x2x1024xf32, #tpu.memory_space<vmem>>, vector<1x2x1024xf32>
      %93 = vector.shape_cast %92 : vector<1x2x1024xf32> to vector<2x1024xf32>
      %94 = arith.maximumf %93, %43 : vector<2x1024xf32>
      %c0_32 = arith.constant 0 : index
      %c0_33 = arith.constant 0 : index
      %c0_34 = arith.constant 0 : index
      %95 = vector.load %arg10[%c0_32, %c0_33, %c0_34] : memref<1x2x1024xf32, #tpu.memory_space<vmem>>, vector<1x2x1024xf32>
      %96 = vector.shape_cast %95 : vector<1x2x1024xf32> to vector<2x1024xf32>
      %97 = vector.shape_cast %94 : vector<2x1024xf32> to vector<1x2x1024xf32>
      tpu.vector_store %arg10[%c0_32, %c0_33, %c0_34], %97 {strides = array<i32>} : memref<1x2x1024xf32, #tpu.memory_space<vmem>>, vector<1x2x1024xf32>,
      %c0_35 = arith.constant 0 : index
      %c0_36 = arith.constant 0 : index
      %c0_37 = arith.constant 0 : index
      %98 = vector.load %arg11[%c0_35, %c0_36, %c0_37] : memref<1x2x1024xf32, #tpu.memory_space<vmem>>, vector<1x2x1024xf32>
      %99 = vector.shape_cast %98 : vector<1x2x1024xf32> to vector<2x1024xf32>
      %100 = arith.maximumf %99, %82 : vector<2x1024xf32>
      %c0_38 = arith.constant 0 : index
      %c0_39 = arith.constant 0 : index
      %c0_40 = arith.constant 0 : index
      %101 = vector.load %arg11[%c0_38, %c0_39, %c0_40] : memref<1x2x1024xf32, #tpu.memory_space<vmem>>, vector<1x2x1024xf32>
      %102 = vector.shape_cast %101 : vector<1x2x1024xf32> to vector<2x1024xf32>
      %103 = vector.shape_cast %100 : vector<2x1024xf32> to vector<1x2x1024xf32>
      tpu.vector_store %arg11[%c0_38, %c0_39, %c0_40], %103 {strides = array<i32>} : memref<1x2x1024xf32, #tpu.memory_space<vmem>>, vector<1x2x1024xf32>,
    } else {
    }
    %c0_i32_27 = arith.constant 0 : i32
    %89 = arith.cmpi eq, %arg1, %c0_i32_27 : i32
    %90 = arith.extui %89 : i1 to i32
    %c0_i32_28 = arith.constant 0 : i32
    %91 = arith.cmpi ne, %90, %c0_i32_28 : i32
    scf.if %91 {
      %c0_29 = arith.constant 0 : index
      %c0_30 = arith.constant 0 : index
      %92 = vector.load %arg9[%c0_29, %c0_30] : memref<1x1024xf32, #tpu.memory_space<vmem>>, vector<1x1024xf32>
      %c0_31 = arith.constant 0 : index
      %c0_32 = arith.constant 0 : index
      %c0_33 = arith.constant 0 : index
      %93 = vector.load %arg10[%c0_31, %c0_32, %c0_33] : memref<1x2x1024xf32, #tpu.memory_space<vmem>>, vector<1x2x1024xf32>
      %94 = vector.shape_cast %93 : vector<1x2x1024xf32> to vector<2x1024xf32>
      %95 = vector.broadcast %92 : vector<1x1024xf32> to vector<2x1024xf32>
      %96 = arith.addf %94, %95 : vector<2x1024xf32>
      %c0_34 = arith.constant 0 : index
      %c0_35 = arith.constant 0 : index
      %c0_36 = arith.constant 0 : index
      %97 = vector.load %arg10[%c0_34, %c0_35, %c0_36] : memref<1x2x1024xf32, #tpu.memory_space<vmem>>, vector<1x2x1024xf32>
      %98 = vector.shape_cast %97 : vector<1x2x1024xf32> to vector<2x1024xf32>
      %99 = vector.shape_cast %96 : vector<2x1024xf32> to vector<1x2x1024xf32>
      tpu.vector_store %arg10[%c0_34, %c0_35, %c0_36], %99 {strides = array<i32>} : memref<1x2x1024xf32, #tpu.memory_space<vmem>>, vector<1x2x1024xf32>,
      %c0_37 = arith.constant 0 : index
      %c0_38 = arith.constant 0 : index
      %c0_39 = arith.constant 0 : index
      %100 = vector.load %arg11[%c0_37, %c0_38, %c0_39] : memref<1x2x1024xf32, #tpu.memory_space<vmem>>, vector<1x2x1024xf32>
      %101 = vector.shape_cast %100 : vector<1x2x1024xf32> to vector<2x1024xf32>
      %102 = vector.broadcast %92 : vector<1x1024xf32> to vector<2x1024xf32>
      %103 = arith.addf %101, %102 : vector<2x1024xf32>
      %c0_40 = arith.constant 0 : index
      %c0_41 = arith.constant 0 : index
      %c0_42 = arith.constant 0 : index
      %104 = vector.load %arg11[%c0_40, %c0_41, %c0_42] : memref<1x2x1024xf32, #tpu.memory_space<vmem>>, vector<1x2x1024xf32>
      %105 = vector.shape_cast %104 : vector<1x2x1024xf32> to vector<2x1024xf32>
      %106 = vector.shape_cast %103 : vector<2x1024xf32> to vector<1x2x1024xf32>
      tpu.vector_store %arg11[%c0_40, %c0_41, %c0_42], %106 {strides = array<i32>} : memref<1x2x1024xf32, #tpu.memory_space<vmem>>, vector<1x2x1024xf32>,
    } else {
    }
    return
  }
  func.func @transform_0(%arg0: i32, %arg1: i32) -> (i32, i32, i32) {
    %c0_i32 = arith.constant 0 : i32
    %c0_i32_0 = arith.constant 0 : i32
    return %arg0, %arg1, %c0_i32 : i32, i32, i32
  }
  func.func @transform_1(%arg0: i32, %arg1: i32) -> (i32, i32, i32) {
    %c0_i32 = arith.constant 0 : i32
    %c0_i32_0 = arith.constant 0 : i32
    return %arg0, %arg1, %c0_i32 : i32, i32, i32
  }
  func.func @transform_2(%arg0: i32, %arg1: i32) -> (i32, i32) {
    %c0_i32 = arith.constant 0 : i32
    %c0_i32_0 = arith.constant 0 : i32
    %c0_i32_1 = arith.constant 0 : i32
    return %c0_i32, %c0_i32_0 : i32, i32
  }
  func.func @transform_3(%arg0: i32, %arg1: i32) -> (i32, i32) {
    %c0_i32 = arith.constant 0 : i32
    %c0_i32_0 = arith.constant 0 : i32
    %c0_i32_1 = arith.constant 0 : i32
    return %c0_i32, %c0_i32_0 : i32, i32
  }
  func.func @transform_4(%arg0: i32, %arg1: i32) -> (i32, i32) {
    %c0_i32 = arith.constant 0 : i32
    %c0_i32_0 = arith.constant 0 : i32
    %c0_i32_1 = arith.constant 0 : i32
    return %c0_i32, %c0_i32_0 : i32, i32
  }
  func.func @transform_5(%arg0: i32, %arg1: i32) -> (i32, i32) {
    %c0_i32 = arith.constant 0 : i32
    %c0_i32_0 = arith.constant 0 : i32
    %c0_i32_1 = arith.constant 0 : i32
    return %c0_i32, %c0_i32_0 : i32, i32
  }
  func.func @transform_6(%arg0: i32, %arg1: i32) -> (i32, i32) {
    %c0_i32 = arith.constant 0 : i32
    %c0_i32_0 = arith.constant 0 : i32
    %c0_i32_1 = arith.constant 0 : i32
    return %c0_i32, %c0_i32_0 : i32, i32
  }
  func.func @transform_7(%arg0: i32, %arg1: i32) -> (i32, i32) {
    %c0_i32 = arith.constant 0 : i32
    %c0_i32_0 = arith.constant 0 : i32
    %c0_i32_1 = arith.constant 0 : i32
    return %c0_i32, %c0_i32_0 : i32, i32
  }
  func.func @transform_8(%arg0: i32, %arg1: i32) -> (i32, i32, i32) {
    %c0_i32 = arith.constant 0 : i32
    %c0_i32_0 = arith.constant 0 : i32
    %c0_i32_1 = arith.constant 0 : i32
    return %arg0, %c0_i32, %c0_i32_0 : i32, i32, i32
  }
  func.func @transform_9(%arg0: i32, %arg1: i32) -> (i32, i32, i32) {
    %c0_i32 = arith.constant 0 : i32
    %c0_i32_0 = arith.constant 0 : i32
    %c0_i32_1 = arith.constant 0 : i32
    return %arg0, %c0_i32, %c0_i32_0 : i32, i32, i32
  }
}

</mosaic_0001>

<bundles_post_ra>
// kernel: tpu_custom_call.1
= control target key start
LH: loop header
LB: loop body
LE: loop exit
PB: predicated region body
PF: predicated region fallthrough
CT: control target
= control target key end

     0   :  { %15 = vsyncpa [#allocation3], 0  ;;  %s3299_s0 = inlined_call_operand.hbm [shape: f32[2,16,4], index: 0, kind: input, shape index: {}]   ;;  %s3300_s1 = inlined_call_operand.hbm [shape: f32[2,16,4], index: 1, kind: input, shape index: {}]   ;;  %s3301_s2 = inlined_call_operand.hbm [shape: f32[4,128], index: 2, kind: input, shape index: {}]   ;;  %s3302_s3 = inlined_call_operand.hbm [shape: f32[1,128], index: 3, kind: input, shape index: {}]   ;;  %s3303_s4 = inlined_call_operand.hbm [shape: bf16[128,128], index: 4, kind: input, shape index: {}]   ;;  %s3304_s5 = inlined_call_operand.hbm [shape: f32[1,128], index: 5, kind: input, shape index: {}]   ;;  %s3305_s6 = inlined_call_operand.hbm [shape: bf16[128,1024], index: 6, kind: input, shape index: {}]   ;;  %s3306_s7 = inlined_call_operand.hbm [shape: f32[1,1024], index: 7, kind: input, shape index: {}]   ;;  %s3307_s8 = inlined_call_operand.hbm [shape: f32[1,2,1024], index: 8, kind: output, shape index: {0}]   ;;  %s3308_s9 = inlined_call_operand.hbm [shape: f32[1,2,1024], index: 9, kind: output, shape index: {1}]  }
   0x1   :  { %16 = vsyncpa [#allocation6], 0 }
   0x2   :  { %17 = vsyncpa [#allocation9], 0 }
   0x3   :  { %18 = vsyncpa [#allocation12], 0 }
   0x4   :  { %19 = vsyncpa [#allocation15], 0 }
   0x5   :  { %20 = vsyncpa [#allocation4], 0 }
   0x6   :  { %21 = vsyncpa [#allocation18], 0  ;;  %s2559_s30 = smov [#allocation5]   ;;  %s2560_s11 = smov [#allocation8]  }
   0x7   :  { %s39_s10 = sshll.u32 %s2559_s30, 4  ;;  %s62_s12 = sshll.u32 %s2560_s11, 4  ;;  %s40_s10 = int_to_ptr.vmem [resolvable:$true] %s39_s10  ;;  %s2630_s12 = int_to_ptr.vmem [resolvable:$true] %s62_s12 }
   0x8   :  { %s2325_s15 = scalar_lea.hbm %s3300_s1, 512 }
   0x9   :  { %p2326_p0 = scmp.ne.s32.totalorder %s3300_s1, %s2325_s15  ;;  %p2329_p1 = scmp.lt.u32.totalorder %s2325_s15, %s3300_s1 }
   0xb   :  { %p2331_p2 = pnand %p2329_p1, %p2326_p0 }
   0xd   :  { %2334 = shalt.err (!%p2331_p2)
}
   0xe   :  { %s2335_s20 = scalar_lea.vmem %s40_s10, 512  ;;  %p2340_p4 = scmp.lt.s32.totalorder %s40_s10, %s40_s10 }
   0xf   :  { %p2336_p3 = scmp.ne.s32.totalorder %s40_s10, %s2335_s20  ;;  %p2341_p5 = scmp.lt.s32.totalorder %s2335_s20, %s2335_s20 }
  0x11   :  { %p2342_p6 = por %p2341_p5, %p2340_p4 }
  0x13   :  { %p2343_p7 = pnand %p2342_p6, %p2336_p3 }
  0x15   :  { %2346 = shalt.err (!%p2343_p7)
}
  0x16   :  { %s2561_s21 = smov 128   ;;  %s2562_s22 = smov 8  }
  0x17   :  { %45 = dma.hbm_to_vmem [thread:$0]  %s3300_s1, 512, %s40_s10, [#allocation6], %s2561_s21, %s2561_s21, %s2562_s22  }
  0x18   :  { %s2347_s27 = scalar_lea.hbm %s3302_s3, 16 }
  0x19   :  { %p2348_p8 = scmp.ne.s32.totalorder %s3302_s3, %s2347_s27  ;;  %p2351_p9 = scmp.lt.u32.totalorder %s2347_s27, %s3302_s3 }
  0x1b   :  { %p2353_p10 = pnand %p2351_p9, %p2348_p8 }
  0x1d   :  { %2356 = shalt.err (!%p2353_p10)
}
  0x1e   :  { %s2357_s13 = scalar_lea.vmem %s2630_s12, 16  ;;  %s2361_s1 = scalar_lea.vmem %s2630_s12, 32 }
  0x1f   :  { %p2358_p11 = scmp.ne.s32.totalorder %s2630_s12, %s2357_s13  ;;  %p2362_p12 = scmp.lt.s32.totalorder %s2630_s12, %s2630_s12 }
  0x20   :  { %p2363_p13 = scmp.lt.s32.totalorder %s2361_s1, %s2357_s13 }
  0x22   :  { %p2364_p0 = por %p2363_p13, %p2362_p12 }
  0x24   :  { %p2365_p1 = pnand %p2364_p0, %p2358_p11 }
  0x26   :  { %2368 = shalt.err (!%p2365_p1)
}
  0x27   :  { %65 = dma.hbm_to_vmem [thread:$0]  %s3302_s3, 16, %s2630_s12, [#allocation9]  }
  0x28   :  { %s2563_s15 = smov [#allocation11]   ;;  %s2564_s17 = smov [#allocation2]  }
  0x29   :  { %s84_s16 = sshll.u32 %s2563_s15, 4  ;;  %s27_s18 = sshll.u32 %s2564_s17, 4  ;;  %s85_s16 = int_to_ptr.vmem [resolvable:$true] %s84_s16  ;;  %s2665_s18 = int_to_ptr.vmem [resolvable:$true] %s27_s18 }
  0x2a   :  { %s2369_s23 = scalar_lea.hbm %s3304_s5, 16 }
  0x2b   :  { %p2370_p2 = scmp.ne.s32.totalorder %s3304_s5, %s2369_s23  ;;  %p2373_p3 = scmp.lt.u32.totalorder %s2369_s23, %s3304_s5 }
  0x2d   :  { %p2375_p4 = pnand %p2373_p3, %p2370_p2 }
  0x2f   :  { %2378 = shalt.err (!%p2375_p4)
}
  0x30   :  { %s2379_s3 = scalar_lea.vmem %s85_s16, 16  ;;  %s2383_s12 = scalar_lea.vmem %s85_s16, 32 }
  0x31   :  { %p2380_p5 = scmp.ne.s32.totalorder %s85_s16, %s2379_s3  ;;  %p2384_p6 = scmp.lt.s32.totalorder %s85_s16, %s85_s16 }
  0x32   :  { %p2385_p7 = scmp.lt.s32.totalorder %s2383_s12, %s2379_s3 }
  0x34   :  { %p2386_p8 = por %p2385_p7, %p2384_p6 }
  0x36   :  { %p2387_p9 = pnand %p2386_p8, %p2380_p5 }
  0x38   :  { %2390 = shalt.err (!%p2387_p9)
}
  0x39   :  { %87 = dma.hbm_to_vmem [thread:$0]  %s3304_s5, 16, %s85_s16, [#allocation12]  }
  0x3a   :  { %s2391_s13 = scalar_lea.hbm %s3299_s0, 512 }
  0x3b   :  { %p2392_p10 = scmp.ne.s32.totalorder %s3299_s0, %s2391_s13  ;;  %p2395_p11 = scmp.lt.u32.totalorder %s2391_s13, %s3299_s0 }
  0x3d   :  { %p2397_p12 = pnand %p2395_p11, %p2392_p10 }
  0x3f   :  { %2400 = shalt.err (!%p2397_p12)
}
  0x40   :  { %s2401_s17 = scalar_lea.vmem %s2665_s18, 512  ;;  %p2406_p0 = scmp.lt.s32.totalorder %s2665_s18, %s2665_s18 }
  0x41   :  { %p2402_p13 = scmp.ne.s32.totalorder %s2665_s18, %s2401_s17  ;;  %p2407_p1 = scmp.lt.s32.totalorder %s2401_s17, %s2401_s17 }
  0x43   :  { %p2408_p2 = por %p2407_p1, %p2406_p0 }
  0x45   :  { %p2409_p3 = pnand %p2408_p2, %p2402_p13 }
  0x47   :  { %2412 = shalt.err (!%p2409_p3)
}
  0x48   :  { %33 = dma.hbm_to_vmem [thread:$0]  %s3299_s0, 512, %s2665_s18, [#allocation3], %s2561_s21, %s2561_s21, %s2562_s22  }
  0x49   :  { %s2565_s19 = smov [#allocation7]   ;;  %s2566_s23 = smov [#allocation10]  }
  0x4a   :  { %s52_s20 = sshll.u32 %s2565_s19, 4  ;;  %s71_s24 = sshll.u32 %s2566_s23, 4  ;;  %s53_s20 = int_to_ptr.vmem [resolvable:$true] %s52_s20  ;;  %s2699_s24 = int_to_ptr.vmem [resolvable:$true] %s71_s24 }
  0x4b   :  { %s2413_s27 = scalar_lea.hbm %s3301_s2, 64 }
  0x4c   :  { %p2414_p4 = scmp.ne.s32.totalorder %s3301_s2, %s2413_s27  ;;  %p2417_p5 = scmp.lt.u32.totalorder %s2413_s27, %s3301_s2 }
  0x4e   :  { %p2419_p6 = pnand %p2417_p5, %p2414_p4 }
  0x50   :  { %2422 = shalt.err (!%p2419_p6)
}
  0x51   :  { %s2423_s0 = scalar_lea.vmem %s53_s20, 64  ;;  %p2428_p8 = scmp.lt.s32.totalorder %s53_s20, %s53_s20 }
  0x52   :  { %p2424_p7 = scmp.ne.s32.totalorder %s53_s20, %s2423_s0  ;;  %p2429_p9 = scmp.lt.s32.totalorder %s2423_s0, %s2423_s0 }
  0x54   :  { %p2430_p10 = por %p2429_p9, %p2428_p8 }
  0x56   :  { %p2431_p11 = pnand %p2430_p10, %p2424_p7 }
  0x58   :  { %2434 = shalt.err (!%p2431_p11)
}
  0x59   :  { %55 = dma.hbm_to_vmem [thread:$0]  %s3301_s2, 64, %s53_s20, [#allocation6]  }
  0x5a   :  { %s2435_s11 = scalar_lea.hbm %s3303_s4, 1024 }
  0x5b   :  { %p2436_p12 = scmp.ne.s32.totalorder %s3303_s4, %s2435_s11  ;;  %p2439_p13 = scmp.lt.u32.totalorder %s2435_s11, %s3303_s4 }
  0x5d   :  { %p2441_p0 = pnand %p2439_p13, %p2436_p12 }
  0x5f   :  { %2444 = shalt.err (!%p2441_p0)
}
  0x60   :  { %s2445_s15 = scalar_lea.vmem %s2699_s24, 1024  ;;  %p2450_p2 = scmp.lt.s32.totalorder %s2699_s24, %s2699_s24 }
  0x61   :  { %p2446_p1 = scmp.ne.s32.totalorder %s2699_s24, %s2445_s15  ;;  %p2451_p3 = scmp.lt.s32.totalorder %s2445_s15, %s2445_s15 }
  0x63   :  { %p2452_p4 = por %p2451_p3, %p2450_p2 }
  0x65   :  { %p2453_p5 = pnand %p2452_p4, %p2446_p1 }
  0x67   :  { %2456 = shalt.err (!%p2453_p5)
}
  0x68   :  { %s2567_s2 = smov 64   ;;  %s2568_s17 = smov 4  }
  0x69   :  { %77 = dma.hbm_to_vmem [thread:$0]  %s3303_s4, 1024, %s2699_s24, [#allocation9], %s2567_s2, %s2567_s2, %s2568_s17  }
  0x6a   :  { %s2569_s19 = smov [#allocation13]   ;;  %s2457_s26 = scalar_lea.hbm %s3305_s6, 8192 }
  0x6b   :  { %s93_s20 = sshll.u32 %s2569_s19, 4  ;;  %p2458_p6 = scmp.ne.s32.totalorder %s3305_s6, %s2457_s26  ;;  %s94_s20 = int_to_ptr.vmem [resolvable:$true] %s93_s20 }
  0x6c   :  { %p2461_p7 = scmp.lt.u32.totalorder %s2457_s26, %s3305_s6 }
  0x6e   :  { %p2463_p8 = pnand %p2461_p7, %p2458_p6 }
  0x70   :  { %2466 = shalt.err (!%p2463_p8)
}
  0x71   :  { %s2467_s29 = scalar_lea.vmem %s94_s20, 8192  ;;  %p2472_p10 = scmp.lt.s32.totalorder %s94_s20, %s94_s20 }
  0x72   :  { %p2468_p9 = scmp.ne.s32.totalorder %s94_s20, %s2467_s29  ;;  %p2473_p11 = scmp.lt.s32.totalorder %s2467_s29, %s2467_s29 }
  0x74   :  { %p2474_p12 = por %p2473_p11, %p2472_p10 }
  0x76   :  { %p2475_p13 = pnand %p2474_p12, %p2468_p9 }
  0x78   :  { %2478 = shalt.err (!%p2475_p13)
}
  0x79   :  { %s2570_s4 = smov 512   ;;  %s2571_s24 = smov 32  }
  0x7a   :  { %99 = dma.hbm_to_vmem [thread:$0]  %s3305_s6, 8192, %s94_s20, [#allocation12], %s2570_s4, %s2570_s4, %s2571_s24  }
  0x7b   :  { %s2572_s22 = smov [#allocation14]   ;;  %s2479_s13 = scalar_lea.hbm %s3306_s7, 128 }
  0x7c   :  { %s106_s18 = sshll.u32 %s2572_s22, 4  ;;  %p2480_p0 = scmp.ne.s32.totalorder %s3306_s7, %s2479_s13  ;;  %s107_s18 = int_to_ptr.vmem [resolvable:$true] %s106_s18 }
  0x7d   :  { %p2483_p1 = scmp.lt.u32.totalorder %s2479_s13, %s3306_s7 }
  0x7f   :  { %p2485_p2 = pnand %p2483_p1, %p2480_p0 }
  0x81   :  { %2488 = shalt.err (!%p2485_p2)
}
  0x82   :  { %s2489_s2 = scalar_lea.vmem %s107_s18, 128  ;;  %p2494_p4 = scmp.lt.s32.totalorder %s107_s18, %s107_s18 }
  0x83   :  { %p2490_p3 = scmp.ne.s32.totalorder %s107_s18, %s2489_s2  ;;  %p2495_p5 = scmp.lt.s32.totalorder %s2489_s2, %s2489_s2 }
  0x85   :  { %p2496_p6 = por %p2495_p5, %p2494_p4 }
  0x87   :  { %p2497_p7 = pnand %p2496_p6, %p2490_p3 }
  0x89   :  { %2500 = shalt.err (!%p2497_p7)
}
  0x8a   :  { %109 = dma.hbm_to_vmem [thread:$0]  %s3306_s7, 128, %s107_s18, [#allocation15]  }
  0x8b   :  { %2545 = dma.done.wait [#allocation3], 512  }
  0x8c   :  { %2546 = vsyncadd [#allocation3], 4294966784 }
  0x8d   :  { %2547 = dma.done.wait [#allocation6], 576  }
  0x8e   :  { %2548 = vsyncadd [#allocation6], 4294966720 }
  0x8f   :  { %2549 = dma.done.wait [#allocation9], 1040  }
  0x90   :  { %2550 = vsyncadd [#allocation9], 4294966256 }
  0x91   :  { %2551 = dma.done.wait [#allocation12], 8208  }
  0x92   :  { %2552 = vsyncadd [#allocation12], 4294959088 }
  0x93   :  { %2553 = dma.done.wait [#allocation15], 128  }
  0x94   :  { %2554 = vsyncadd [#allocation15], 4294967168  ;;  %v3313_v0 = vmov 0   ;;  %v220_v1 = vld [vmem:[#allocation2 + $0x10] sm:$0xff]  ;;  %v218_v2 = vld [vmem:[#allocation2] sm:$0xff]  ;;  %v2574_v5 = vmov 1   ;;  %v242_v52 = vlaneseq }
  0x95   :  { %2302 = vset.pattern.permute.xlu1 %v3313_v0  ;;  %2301 = vset.pattern.permute.xlu0 %v3313_v0  ;;  %v221_v3 = vld [vmem:[#allocation2 + $0x18] sm:$0xff]  ;;  %v219_v4 = vld [vmem:[#allocation2 + $0x8] sm:$0xff]  ;;  %v2575_v8 = vmov 2   ;;  %v2576_v11 = vmov 3   ;;  %v1103_v16 = vld [vmem:[#allocation5] sm:$0xff]  ;;  %vm1685_vm0 = vcmask 1041409  }
  0x96   :  { %811 = vmatprep.mubr.bf16.mxu1 %v3313_v0  ;;  %234 = vperm.xlu1 %2302, %v220_v1   ;;  %v2759_v6 = vld [vmem:[#allocation10] sm:$0xff]   ;;  %v2763_v7 = vld [vmem:[#allocation10 + $0x8] sm:$0xff]   ;;  %v2769_v9 = vld [vmem:[#allocation10 + $0x10] sm:$0xff]   ;;  %v2850_v55 = vshrl.u32 %v242_v52, 7  ;;  %vm1687_vm1 = vcmask 1043459   ;;  %vm1689_vm2 = vcmask 1045509  }
  0x97   :  { %224 = vperm.xlu0 %2301, %v218_v2   ;;  %2240 = vmatprep.subr.bf16.mxu0 %v2759_v6  ;;  %v2773_v10 = vld [vmem:[#allocation10 + $0x18] sm:$0xff]   ;;  %v2778_v12 = vld [vmem:[#allocation10 + $0x20] sm:$0xff]   ;;  %v2782_v13 = vld [vmem:[#allocation10 + $0x28] sm:$0xff]   ;;  %vm1691_vm3 = vcmask 1047559   ;;  %s2578_s7 = smov [#allocation16]  }
  0x98   :  { %2241 = vmatpush3.bf16.msra.mxu0 %v2759_v6  ;;  %v2788_v14 = vld [vmem:[#allocation10 + $0x30] sm:$0xff]   ;;  %v2792_v15 = vld [vmem:[#allocation10 + $0x38] sm:$0xff]   ;;  %v1104_v18 = vld [vmem:[#allocation5 + $0x8] sm:$0xff]  ;;  %3359 = vst [vmem:[#allocation27_spill] sm:$0xff] %v2850_v55  ;;  %v3312_v58 = vsub.s32 0, %v2850_v55  ;;  %v3311_v60 = vsub.s32 1, %v2850_v55 }
  0x99   :  { %2242 = vmatprep.subr.bf16.mxu0 %v2763_v7  ;;  %v2797_v17 = vld [vmem:[#allocation5 + $0x10] sm:$0xff]  ;;  %v154_v19 = vld [vmem:[#allocation13] sm:$0xff]  ;;  %v1106_v32 = vld [vmem:[#allocation5 + $0x18] sm:$0xff]  ;;  %v3310_v62 = vsub.s32 2, %v2850_v55  ;;  %s2119_s5 = sshll.u32 %s2578_s7, 4  ;;  %s2120_s5 = int_to_ptr.vmem [resolvable:$true] %s2119_s5 }
  0x9a   :  { %239 = vperm.xlu1 %2302, %v221_v3   ;;  %v158_v20 = vld [vmem:[#allocation13 + $0x20] sm:$0xff]  ;;  %v155_v22 = vld [vmem:[#allocation13 + $0x8] sm:$0xff]  ;;  %v135_v59 = vld [vmem:[#allocation7] sm:$0xf]  ;;  %s2501_s16 = scalar_lea.vmem %s2120_s5, 256  ;;  %p2506_p9 = scmp.lt.s32.totalorder %s2120_s5, %s2120_s5 }
  0x9b   :  { %229 = vperm.xlu0 %2301, %v219_v4   ;;  %v2799_v21 = vcombine.high %v154_v19, %v158_v20  ;;  %v159_v23 = vld [vmem:[#allocation13 + $0x28] sm:$0xff]  ;;  %v2801_v24 = vcombine.low %v154_v19, %v158_v20  ;;  %v162_v25 = vld [vmem:[#allocation13 + $0x40] sm:$0xff]  ;;  %v2856_v61 = vrot.slane %v135_v59, %v3312_v58  ;;  %v164_v58 = vld [vmem:[#allocation13 + $0x50] sm:$0xff]  ;;  %p2502_p8 = scmp.ne.s32.totalorder %s2120_s5, %s2501_s16  ;;  %p2507_p10 = scmp.lt.s32.totalorder %s2501_s16, %s2501_s16 }
  0x9c   :  { %2243 = vmatpush3.bf16.msra.mxu0 %v2763_v7  ;;  %v2803_v26 = vcombine.low %v155_v22, %v159_v23  ;;  %v2805_v27 = vcombine.high %v155_v22, %v159_v23  ;;  %v166_v28 = vld [vmem:[#allocation13 + $0x60] sm:$0xff] }
  0x9d   :  { %2244 = vmatprep.subr.bf16.mxu0 %v2769_v9  ;;  %779 = vmatprep.subr.bf16.mxu1 %v2799_v21  ;;  %v2808_v29 = vcombine.high %v162_v25, %v166_v28  ;;  %v170_v30 = vld [vmem:[#allocation13 + $0x80] sm:$0xff]  ;;  %v2814_v33 = vcombine.low %v162_v25, %v166_v28  ;;  %p2508_p11 = por %p2507_p10, %p2506_p9 }
  0x9e   :  { %2304 = vset.pattern.permute.xlu1 %v2574_v5  ;;  %3358 = vst [vmem:[#allocation26_spill] sm:$0xff] %v2803_v26  ;;  %v174_v31 = vld [vmem:[#allocation13 + $0xa0] sm:$0xff]  ;;  %780 = vmatpush1.bf16.msra.mxu1 %v2801_v24 }
  0x9f   :  { %2303 = vset.pattern.permute.xlu0 %v2574_v5  ;;  %265 = vperm.xlu1 %2304, %v219_v4   ;;  %v2817_v34 = vcombine.high %v170_v30, %v174_v31  ;;  %v178_v35 = vld [vmem:[#allocation13 + $0xc0] sm:$0xff]  ;;  %v2820_v37 = vcombine.low %v170_v30, %v174_v31  ;;  %p2509_p12 = pnand %p2508_p11, %p2502_p8 }
  0xa0   :  { %261 = vperm.xlu0 %2303, %v218_v2   ;;  %2245 = vmatpush3.bf16.msra.mxu0 %v2769_v9  ;;  %v182_v36 = vld [vmem:[#allocation13 + $0xe0] sm:$0xff] }
  0xa1   :  { %2246 = vmatprep.subr.bf16.mxu0 %v2773_v10  ;;  %781 = vmatprep.subr.bf16.mxu1 %v2808_v29  ;;  %v2823_v38 = vcombine.high %v178_v35, %v182_v36  ;;  %v186_v39 = vld [vmem:[#allocation13 + $0x100] sm:$0xff]  ;;  %v2827_v41 = vcombine.low %v178_v35, %v182_v36 }
  0xa2   :  { %782 = vmatpush1.bf16.msra.mxu1 %v2814_v33  ;;  %v190_v40 = vld [vmem:[#allocation13 + $0x120] sm:$0xff] }
  0xa3   :  { %269 = vperm.xlu1 %2304, %v220_v1   ;;  %783 = vmatprep.subr.bf16.mxu1 %v2817_v34  ;;  %v2831_v42 = vcombine.high %v186_v39, %v190_v40  ;;  %v194_v43 = vld [vmem:[#allocation13 + $0x140] sm:$0xff]  ;;  %v2835_v45 = vcombine.low %v186_v39, %v190_v40 }
  0xa4   :  { %273 = vperm.xlu0 %2303, %v221_v3   ;;  %2247 = vmatpush3.bf16.msra.mxu0 %v2773_v10  ;;  %v198_v44 = vld [vmem:[#allocation13 + $0x160] sm:$0xff] }
  0xa5   :  { %2248 = vmatprep.subr.bf16.mxu0 %v2778_v12  ;;  %v2838_v46 = vcombine.high %v194_v43, %v198_v44  ;;  %v2843_v47 = vcombine.low %v194_v43, %v198_v44 }
  0xa6   :  { %784 = vmatpush1.bf16.msra.mxu1 %v2820_v37 }
  0xa7   :  { %2305 = vset.pattern.permute.xlu1 %v2575_v8  ;;  %785 = vmatprep.subr.bf16.mxu1 %v2823_v38 }
  0xa8   :  { %2306 = vset.pattern.permute.xlu0 %v2575_v8  ;;  %289 = vperm.xlu1 %2305, %v218_v2  }
  0xa9   :  { %293 = vperm.xlu0 %2306, %v219_v4   ;;  %2249 = vmatpush3.bf16.msra.mxu0 %v2778_v12 }
  0xaa   :  { %2250 = vmatprep.subr.bf16.mxu0 %v2782_v13  ;;  %786 = vmatpush1.bf16.msra.mxu1 %v2827_v41 }
  0xab   :  { %787 = vmatprep.subr.bf16.mxu1 %v2831_v42 }
  0xac   :  { %297 = vperm.xlu1 %2305, %v220_v1  }
  0xad   :  { %2307 = vset.pattern.permute.xlu0 %v2576_v11  ;;  %2251 = vmatpush3.bf16.msra.mxu0 %v2782_v13 }
  0xae   :  { %317 = vperm.xlu0 %2307, %v218_v2   ;;  %2252 = vmatprep.subr.bf16.mxu0 %v2788_v14 }
  0xaf   :  { %788 = vmatpush1.bf16.msra.mxu1 %v2835_v45 }
  0xb0   :  { %301 = vperm.xlu1 %2305, %v221_v3   ;;  %789 = vmatprep.subr.bf16.mxu1 %v2838_v46 }
  0xb1   :  { %2253 = vmatpush3.bf16.msra.mxu0 %v2788_v14 }
  0xb2   :  { %329 = vperm.xlu0 %2307, %v221_v3   ;;  %2254 = vmatprep.subr.bf16.mxu0 %v2792_v15  ;;  %v2862_v3 = vrot.slane %v135_v59, %v3311_v60 }
  0xb3   :  { %790 = vmatpush1.bf16.msra.mxu1 %v2843_v47 }
  0xb4   :  { %2308 = vset.pattern.permute.xlu1 %v2576_v11 }
  0xb5   :  { %321 = vperm.xlu1 %2308, %v219_v4   ;;  %2255 = vmatpush3.bf16.msra.mxu0 %v2792_v15  ;;  %v3309_v4 = vsub.s32 3, %v2850_v55 }
  0xb6   :  { %2310 = vset.pattern.permute.xlu0 %v3313_v0  ;;  %832 = vmatprep.subr.bf16.mxu0 %v2805_v27 }
  0xb7   :  { %1114 = vperm.xlu0 %2310, %v1104_v18   ;;  %v2877_v22 = vrot.slane %v135_v59, %v3309_v4 }
  0xb9   :  { %325 = vperm.xlu1 %2308, %v220_v1  }
  0xbb   :  { %2311 = vset.pattern.permute.xlu0 %v2574_v5 }
  0xbc   :  { %1136 = vperm.xlu0 %2311, %v1103_v16  }
  0xbd   :  { %2309 = vset.pattern.permute.xlu1 %v3313_v0 }
  0xbe   :  { %1109 = vperm.xlu1 %2309, %v1103_v16  }
  0xc0   :  { %1148 = vperm.xlu0 %2311, %v1106_v32  }
  0xc2   :  { %1119 = vperm.xlu1 %2309, %v2797_v17  }
  0xc4   :  { %2314 = vset.pattern.permute.xlu0 %v2575_v8 }
  0xc5   :  { %1164 = vperm.xlu0 %2314, %v1104_v18  }
  0xc6   :  { %1124 = vperm.xlu1 %2309, %v1106_v32  }
  0xc9   :  { %2315 = vset.pattern.permute.xlu0 %v2576_v11 }
  0xca   :  { %2312 = vset.pattern.permute.xlu1 %v2574_v5  ;;  %1184 = vperm.xlu0 %2315, %v1103_v16  }
  0xcb   :  { %1140 = vperm.xlu1 %2312, %v1104_v18  }
  0xce   :  { %1196 = vperm.xlu0 %2315, %v1106_v32  }
  0xcf   :  { %1144 = vperm.xlu1 %2312, %v2797_v17  }
  0xd3   :  { %2313 = vset.pattern.permute.xlu1 %v2575_v8  ;;  %v2868_v8 = vrot.slane %v135_v59, %v3310_v62 }
  0xd4   :  { %1160 = vperm.xlu1 %2313, %v1103_v16   ;;  %v2870_v16 = vld [vmem:[#allocation8] ss:$0 sm:$0xff] }
  0xd8   :  { %1168 = vperm.xlu1 %2313, %v2797_v17  }
  0xdc   :  { %1172 = vperm.xlu1 %2313, %v1106_v32  }
  0xe0   :  { %2316 = vset.pattern.permute.xlu1 %v2576_v11 }
  0xe1   :  { %1188 = vperm.xlu1 %2316, %v1104_v18  }
  0xe5   :  { %1192 = vperm.xlu1 %2316, %v2797_v17  }
 0x115   :  { %v235_v48 = vpop.permute.xlu1 %234 }
 0x116   :  { %v225_v49 = vpop.permute.xlu0 %224  ;;  %v248_v32 = vmul.f32 %v2856_v61, %v235_v48 }
 0x117   :  { %v246_v2 = vmul.f32 %v2856_v61, %v225_v49 }
 0x119   :  { %v240_v50 = vpop.permute.xlu1 %239  ;;  %v256_v18 = vadd.f32 %v2870_v16, %v246_v2 }
 0x11a   :  { %v230_v51 = vpop.permute.xlu0 %229  ;;  %v249_v19 = vmul.f32 %v2856_v61, %v240_v50 }
 0x11b   :  { %v247_v5 = vmul.f32 %v2856_v61, %v230_v51 }
 0x11c   :  { %v259_v36 = vadd.f32 %v2870_v16, %v249_v19 }
 0x11d   :  { %v257_v23 = vadd.f32 %v2870_v16, %v247_v5 }
 0x11e   :  { %v266_v53 = vpop.permute.xlu1 %265 }
 0x11f   :  { %v262_v54 = vpop.permute.xlu0 %261  ;;  %v281_v25 = vmul.f32 %v2862_v3, %v266_v53  ;;  %v258_v53 = vadd.f32 %v2870_v16, %v248_v32 }
 0x120   :  { %v280_v20 = vmul.f32 %v2862_v3, %v262_v54 }
 0x121   :  { %v285_v44 = vadd.f32 %v281_v25, %v257_v23 }
 0x122   :  { %v270_v56 = vpop.permute.xlu1 %269  ;;  %v284_v39 = vadd.f32 %v280_v20, %v256_v18 }
 0x123   :  { %v274_v57 = vpop.permute.xlu0 %273  ;;  %v282_v49 = vmul.f32 %v2862_v3, %v270_v56 }
 0x124   :  { %v283_v28 = vmul.f32 %v2862_v3, %v274_v57 }
 0x125   :  { %v286_v5 = vadd.f32 %v282_v49, %v258_v53 }
 0x126   :  { %v287_v51 = vadd.f32 %v283_v28, %v259_v36 }
 0x127   :  { %v290_v63 = vpop.permute.xlu1 %289 }
 0x128   :  { %v294_v1 = vpop.permute.xlu0 %293  ;;  %v308_v30 = vmul.f32 %v2868_v8, %v290_v63 }
 0x129   :  { %v309_v35 = vmul.f32 %v2868_v8, %v294_v1 }
 0x12a   :  { %v312_v52 = vadd.f32 %v308_v30, %v284_v39 }
 0x12b   :  { %v298_v11 = vpop.permute.xlu1 %297  ;;  %v313_v54 = vadd.f32 %v309_v35, %v285_v44 }
 0x12c   :  { %v310_v48 = vmul.f32 %v2868_v8, %v298_v11  ;;  %v167_v11 = vld [vmem:[#allocation13 + $0x68] sm:$0xff] }
 0x12d   :  { %v318_v17 = vpop.permute.xlu0 %317 }
 0x12e   :  { %v336_v40 = vmul.f32 %v2877_v22, %v318_v17  ;;  %v314_v18 = vadd.f32 %v310_v48, %v286_v5  ;;  %v191_v48 = vld [vmem:[#allocation13 + $0x128] sm:$0xff] }
 0x12f   :  { %v302_v31 = vpop.permute.xlu1 %301 }
 0x130   :  { %v311_v43 = vmul.f32 %v2868_v8, %v302_v31  ;;  %v340_v2 = vadd.f32 %v336_v40, %v312_v52  ;;  %v163_v31 = vld [vmem:[#allocation13 + $0x48] sm:$0xff] }
 0x131   :  { %v330_v50 = vpop.permute.xlu0 %329  ;;  %v2894_v39 = vcombine.high %v163_v31, %v167_v11  ;;  %v171_v40 = vld [vmem:[#allocation13 + $0x88] sm:$0xff]  ;;  %v2897_v44 = vcombine.low %v163_v31, %v167_v11  ;;  %v210_v31 = vld [vmem:[#allocation13 + $0x1c0] sm:$0xff] }
 0x132   :  { %v315_v59 = vadd.f32 %v311_v43, %v287_v51  ;;  %v339_v63 = vmul.f32 %v2877_v22, %v330_v50  ;;  %v344_v23 = vmax.f32 %v340_v2, 0.0  ;;  %v175_v43 = vld [vmem:[#allocation13 + $0xa8] sm:$0xff]  ;;  %v214_v11 = vld [vmem:[#allocation13 + $0x1e0] sm:$0xff] }
 0x133   :  { %3360 = vst [vmem:[#allocation28_spill] sm:$0xff] %v2894_v39  ;;  %3361 = vst [vmem:[#allocation29_spill] sm:$0xff] %v2897_v44  ;;  %v2901_v49 = vcombine.high %v171_v40, %v175_v43  ;;  %v179_v50 = vld [vmem:[#allocation13 + $0xc8] sm:$0xff]  ;;  %v2904_v52 = vcombine.low %v171_v40, %v175_v43 }
 0x134   :  { %v322_v57 = vpop.permute.xlu1 %321  ;;  %v343_v56 = vadd.f32 %v339_v63, %v315_v59  ;;  %v183_v51 = vld [vmem:[#allocation13 + $0xe8] sm:$0xff] }
 0x135   :  { %v337_v1 = vmul.f32 %v2877_v22, %v322_v57  ;;  %3362 = vst [vmem:[#allocation30_spill] sm:$0xff] %v2901_v49  ;;  %3363 = vst [vmem:[#allocation31_spill] sm:$0xff] %v2904_v52  ;;  %v2907_v53 = vcombine.high %v179_v50, %v183_v51  ;;  %v2910_v57 = vcombine.low %v179_v50, %v183_v51  ;;  %v195_v63 = vld [vmem:[#allocation13 + $0x148] sm:$0xff]  ;;  %v156_v51 = vld [vmem:[#allocation13 + $0x10] sm:$0xff] }
 0x136   :  { %v347_v32 = vmax.f32 %v343_v56, 0.0  ;;  %v203_v56 = vld [vmem:[#allocation13 + $0x188] sm:$0xff]  ;;  %v2944_v50 = vcombine.low %v210_v31, %v214_v11 }
 0x137   :  { %v341_v17 = vadd.f32 %v337_v1, %v313_v54  ;;  %3364 = vst [vmem:[#allocation32_spill] sm:$0xff] %v2907_v53  ;;  %v187_v54 = vld [vmem:[#allocation13 + $0x108] sm:$0xff]  ;;  %3365 = vst [vmem:[#allocation33_spill] sm:$0xff] %v2910_v57 }
 0x138   :  { %v326_v19 = vpop.permute.xlu1 %325  ;;  %v2913_v59 = vcombine.high %v187_v54, %v191_v48  ;;  %v199_v1 = vld [vmem:[#allocation13 + $0x168] sm:$0xff]  ;;  %v2916_v2 = vcombine.low %v187_v54, %v191_v48  ;;  %v160_v54 = vld [vmem:[#allocation13 + $0x30] sm:$0xff]  ;;  %v157_v48 = vld [vmem:[#allocation13 + $0x18] sm:$0xff] }
 0x139   :  { %v338_v20 = vmul.f32 %v2877_v22, %v326_v19  ;;  %v345_v25 = vmax.f32 %v341_v17, 0.0  ;;  %v2919_v5 = vcombine.high %v195_v63, %v199_v1  ;;  %v2922_v17 = vcombine.low %v195_v63, %v199_v1  ;;  %v206_v19 = vld [vmem:[#allocation13 + $0x1a0] sm:$0xff]  ;;  %v161_v1 = vld [vmem:[#allocation13 + $0x38] sm:$0xff] }
 0x13a   :  { %3366 = vst [vmem:[#allocation34_spill] sm:$0xff] %v2913_v59  ;;  %3367 = vst [vmem:[#allocation35_spill] sm:$0xff] %v2916_v2  ;;  %v2950_v63 = vcombine.high %v156_v51, %v160_v54 }
 0x13b   :  { %v342_v28 = vadd.f32 %v338_v20, %v314_v18  ;;  %v348_v30 = vpack.c.bf16 %v345_v25, %v344_v23  ;;  %3368 = vst [vmem:[#allocation36_spill] sm:$0xff] %v2919_v5  ;;  %3369 = vst [vmem:[#allocation37_spill] sm:$0xff] %v2922_v17  ;;  %v202_v18 = vld [vmem:[#allocation13 + $0x180] sm:$0xff]  ;;  %v207_v23 = vld [vmem:[#allocation13 + $0x1a8] sm:$0xff] }
 0x13c   :  { %v2926_v20 = vcombine.high %v202_v18, %v206_v19  ;;  %v2928_v25 = vcombine.low %v203_v56, %v207_v23  ;;  %3374 = vst [vmem:[#allocation42_spill] sm:$0xff] %v2950_v63 }
 0x13d   :  { %v346_v35 = vmax.f32 %v342_v28, 0.0  ;;  %2256 = vmatprep.mubr.bf16.mxu0 %v348_v30  ;;  %v2930_v28 = vcombine.high %v203_v56, %v207_v23  ;;  %v2932_v30 = vcombine.low %v202_v18, %v206_v19  ;;  %v2952_v18 = vcombine.low %v156_v51, %v160_v54  ;;  %v2960_v23 = vpop.permute.xlu1 %1109 }
 0x13e   :  { %3370 = vst [vmem:[#allocation38_spill] sm:$0xff] %v2928_v25  ;;  %791 = vmatprep.subr.bf16.mxu1 %v2926_v20  ;;  %v2954_v19 = vcombine.low %v157_v48, %v161_v1  ;;  %v2956_v56 = vcombine.high %v157_v48, %v161_v1 }
 0x13f   :  { %v349_v36 = vpack.c.bf16 %v347_v32, %v346_v35  ;;  %3371 = vst [vmem:[#allocation39_spill] sm:$0xff] %v2930_v28  ;;  %792 = vmatpush1.bf16.msra.mxu1 %v2932_v30  ;;  %v211_v32 = vld [vmem:[#allocation13 + $0x1c8] sm:$0xff]  ;;  %v2938_v35 = vcombine.high %v210_v31, %v214_v11  ;;  %3375 = vst [vmem:[#allocation43_spill] sm:$0xff] %v2952_v18  ;;  %v2964_v11 = vld [vmem:[#allocation11] ss:$0 sm:$0xff] }
 0x140   :  { %3376 = vst [vmem:[#allocation44_spill] sm:$0xff] %v2954_v19  ;;  %3377 = vst [vmem:[#allocation45_spill] sm:$0xff] %v2956_v56 }
 0x141   :  { %2257 = vmatmul.mubr.bf16.vlgmr.msra.gmra.mrb[0].mxu0 %v349_v36  ;;  %v215_v36 = vld [vmem:[#allocation13 + $0x1e8] sm:$0xff]  ;;  %793 = vmatprep.subr.bf16.mxu1 %v2938_v35  ;;  %v2962_v31 = vpop.permute.xlu1 %1119  ;;  %3378 = vst [vmem:[#allocation46_spill] sm:$0xff] %v2964_v11 }
 0x142   :  { %833 = vmatpush1.bf16.msra.mxu0 %v2803_v26  ;;  %864 = vmatprep.mubr.bf16.mxu0 %v3313_v0  ;;  %v2940_v40 = vcombine.low %v211_v32, %v215_v36  ;;  %v2942_v43 = vcombine.high %v211_v32, %v215_v36 }
 0x143   :  { %834 = vmatprep.subr.bf16.mxu0 %v2894_v39  ;;  %794 = vmatpush1.bf16.msra.mxu1 %v2944_v50 }
 0x144   :  { %3372 = vst [vmem:[#allocation40_spill] sm:$0xff] %v2940_v40  ;;  %3373 = vst [vmem:[#allocation41_spill] sm:$0xff] %v2942_v43  ;;  %885 = vmatprep.subr.bf16.mxu1 %v2950_v63 }
 0x145   :  { %v2966_v36 = vpop.permute.xlu1 %1124 }
 0x146   :  { %835 = vmatpush1.bf16.msra.mxu0 %v2897_v44  ;;  %v201_v44 = vld [vmem:[#allocation13 + $0x178] sm:$0xff] }
 0x147   :  { %836 = vmatprep.subr.bf16.mxu0 %v2901_v49 }
 0x14a   :  { %837 = vmatpush1.bf16.msra.mxu0 %v2904_v52  ;;  %v193_v52 = vld [vmem:[#allocation13 + $0x138] sm:$0xff] }
 0x14b   :  { %838 = vmatprep.subr.bf16.mxu0 %v2907_v53  ;;  %v189_v53 = vld [vmem:[#allocation13 + $0x118] sm:$0xff] }
 0x14e   :  { %839 = vmatpush1.bf16.msra.mxu0 %v2910_v57  ;;  %v192_v57 = vld [vmem:[#allocation13 + $0x130] sm:$0xff] }
 0x14f   :  { %840 = vmatprep.subr.bf16.mxu0 %v2913_v59  ;;  %v3385_v59 = vmov 0  }
 0x152   :  { %841 = vmatpush1.bf16.msra.mxu0 %v2916_v2  ;;  %v172_v2 = vld [vmem:[#allocation13 + $0x90] sm:$0xff] }
 0x153   :  { %842 = vmatprep.subr.bf16.mxu0 %v2919_v5 }
 0x156   :  { %843 = vmatpush1.bf16.msra.mxu0 %v2922_v17  ;;  %v2972_v17 = vpop.permute.xlu1 %1140 }
 0x157   :  { %844 = vmatprep.subr.bf16.mxu0 %v2930_v28 }
 0x15a   :  { %845 = vmatpush1.bf16.msra.mxu0 %v2928_v25 }
 0x15b   :  { %846 = vmatprep.subr.bf16.mxu0 %v2942_v43  ;;  %v169_v43 = vld [vmem:[#allocation13 + $0x78] sm:$0xff] }
 0x15e   :  { %847 = vmatpush1.bf16.msra.mxu0 %v2940_v40  ;;  %v165_v40 = vld [vmem:[#allocation13 + $0x58] sm:$0xff] }
 0x15f   :  { %938 = vmatprep.subr.bf16.mxu0 %v2956_v56  ;;  %v168_v56 = vld [vmem:[#allocation13 + $0x70] sm:$0xff] }
 0x214   :  { %v2258_v32 = vpop.f32.mrb[0].mxu0 }
 0x215   :  { %v447_v51 = vadd.f32 %v2258_v32, %v2964_v11  ;;  %v438_v54 = vpop.f32.mrb[1].mxu0 }
 0x216   :  { %v439_v4 = vadd.f32 %v2964_v11, %v438_v54  ;;  %v2259_v48 = vpop.f32.mrb[2].mxu0  ;;  %v2978_v54 = vcombine.high %v164_v58, %v168_v56 }
 0x217   :  { %v450_v1 = vadd.f32 %v2259_v48, %v2964_v11  ;;  %v441_v62 = vpop.f32.mrb[3].mxu0  ;;  %v455_v0 = vmax.f32 %v447_v51, 0.0  ;;  %v2980_v48 = vcombine.high %v165_v40, %v169_v43  ;;  %v177_v51 = vld [vmem:[#allocation13 + $0xb8] sm:$0xff] }
 0x218   :  { %v442_v60 = vadd.f32 %v2964_v11, %v441_v62  ;;  %v453_v25 = vmax.f32 %v439_v4, 0.0  ;;  %3379 = vst [vmem:[#allocation47_spill] sm:$0xff] %v2978_v54  ;;  %v176_v62 = vld [vmem:[#allocation13 + $0xb0] sm:$0xff]  ;;  %v173_v11 = vld [vmem:[#allocation13 + $0x98] sm:$0xff]  ;;  %v1115_v4 = vpop.permute.xlu0 %1114 }
 0x219   :  { %v456_v55 = vmax.f32 %v450_v1, 0.0  ;;  %3380 = vst [vmem:[#allocation48_spill] sm:$0xff] %v2980_v48  ;;  %v180_v1 = vld [vmem:[#allocation13 + $0xd0] sm:$0xff] }
 0x21a   :  { %v454_v28 = vmax.f32 %v442_v60, 0.0  ;;  %v2990_v60 = vpop.permute.xlu1 %1144 }
 0x21b   :  { %v2974_v32 = vpack.c.bf16 %v456_v55, %v455_v0  ;;  %v2986_v0 = vcombine.low %v164_v58, %v168_v56  ;;  %v2988_v55 = vcombine.low %v165_v40, %v169_v43  ;;  %v184_v58 = vld [vmem:[#allocation13 + $0xf0] sm:$0xff]  ;;  %v181_v56 = vld [vmem:[#allocation13 + $0xd8] sm:$0xff]  ;;  %v3002_v43 = vcombine.low %v172_v2, %v176_v62 }
 0x21c   :  { %v2976_v5 = vpack.c.bf16 %v454_v28, %v453_v25  ;;  %v2994_v25 = vcombine.high %v172_v2, %v176_v62  ;;  %v2996_v28 = vcombine.high %v173_v11, %v177_v51  ;;  %v185_v40 = vld [vmem:[#allocation13 + $0xf8] sm:$0xff]  ;;  %v3016_v2 = vcombine.low %v180_v1, %v184_v58 }
 0x21d   :  { %3381 = vst [vmem:[#allocation49_spill] sm:$0xff] %v2986_v0  ;;  %3382 = vst [vmem:[#allocation50_spill] sm:$0xff] %v2988_v55 }
 0x21e   :  { %812 = vmatmul.mubr.bf16.vlgmr.msra.gmra.mrb[0].mxu1 %v2976_v5  ;;  %865 = vmatmul.mubr.bf16.vlgmr.msra.gmra.mrb[4].mxu0 %v2976_v5  ;;  %3383 = vst [vmem:[#allocation51_spill] sm:$0xff] %v2994_v25  ;;  %3384 = vst [vmem:[#allocation52_spill] sm:$0xff] %v2996_v28  ;;  %v1161_v49 = vpop.permute.xlu1 %1160 }
 0x21f   :  { %886 = vmatpush1.bf16.msra.mxu1 %v2952_v18  ;;  %939 = vmatpush1.bf16.msra.mxu0 %v2954_v19  ;;  %3386 = vst [vmem:[#allocation53_spill] sm:$0xff] %v3002_v43  ;;  %v3010_v19 = vcombine.high %v181_v56, %v185_v40  ;;  %v188_v18 = vld [vmem:[#allocation13 + $0x110] sm:$0xff]  ;;  %3390 = vst [vmem:[#allocation57_spill] sm:$0xff] %v3016_v2 }
 0x220   :  { %887 = vmatprep.subr.bf16.mxu1 %v2978_v54  ;;  %940 = vmatprep.subr.bf16.mxu0 %v2980_v48  ;;  %v3004_v54 = vcombine.low %v173_v11, %v177_v51  ;;  %v3008_v48 = vcombine.high %v180_v1, %v184_v58  ;;  %v3018_v11 = vcombine.low %v181_v56, %v185_v40 }
 0x221   :  { %821 = vmatprep.mubr.bf16.mxu1 %v3385_v59  ;;  %874 = vmatprep.mubr.bf16.mxu0 %v3385_v59  ;;  %3389 = vst [vmem:[#allocation56_spill] sm:$0xff] %v3010_v19  ;;  %v3022_v62 = vcombine.high %v188_v18, %v192_v57  ;;  %v3024_v51 = vcombine.high %v189_v53, %v193_v52 }
 0x222   :  { %3387 = vst [vmem:[#allocation54_spill] sm:$0xff] %v3004_v54  ;;  %3388 = vst [vmem:[#allocation55_spill] sm:$0xff] %v3008_v48  ;;  %v3030_v1 = vcombine.low %v188_v18, %v192_v57  ;;  %v3032_v58 = vcombine.low %v189_v53, %v193_v52  ;;  %v3034_v56 = vpop.permute.xlu1 %1168  ;;  %v1128_v57 = vmul.f32 %v1115_v4, %v2856_v61  ;;  %v208_v52 = vld [vmem:[#allocation13 + $0x1b0] sm:$0xff]  ;;  %v205_v53 = vld [vmem:[#allocation13 + $0x198] sm:$0xff] }
 0x223   :  { %888 = vmatpush1.bf16.msra.mxu1 %v2986_v0  ;;  %941 = vmatpush1.bf16.msra.mxu0 %v2988_v55  ;;  %v1137_v0 = vpop.permute.xlu0 %1136  ;;  %3391 = vst [vmem:[#allocation58_spill] sm:$0xff] %v3018_v11  ;;  %3392 = vst [vmem:[#allocation59_spill] sm:$0xff] %v3022_v62  ;;  %v197_v55 = vld [vmem:[#allocation13 + $0x158] sm:$0xff]  ;;  %v212_v4 = vld [vmem:[#allocation13 + $0x1d0] sm:$0xff] }
 0x224   :  { %889 = vmatprep.subr.bf16.mxu1 %v2994_v25  ;;  %942 = vmatprep.subr.bf16.mxu0 %v2996_v28  ;;  %3393 = vst [vmem:[#allocation60_spill] sm:$0xff] %v3024_v51  ;;  %v196_v28 = vld [vmem:[#allocation13 + $0x150] sm:$0xff]  ;;  %3394 = vst [vmem:[#allocation61_spill] sm:$0xff] %v3030_v1  ;;  %v209_v18 = vld [vmem:[#allocation13 + $0x1b8] sm:$0xff] }
 0x225   :  { %v200_v25 = vld [vmem:[#allocation13 + $0x170] sm:$0xff]  ;;  %3395 = vst [vmem:[#allocation62_spill] sm:$0xff] %v3032_v58 }
 0x226   :  { %822 = vmatmul.mubr.bf16.gmra.mrb[4].mxu1 %v2974_v32  ;;  %875 = vmatmul.mubr.bf16.gmra.mrb[8].mxu0 %v2974_v32 }
 0x227   :  { %890 = vmatpush1.bf16.msra.mxu1 %v3002_v43  ;;  %943 = vmatpush1.bf16.msra.mxu0 %v3004_v54  ;;  %v3036_v40 = vpop.permute.xlu0 %1148  ;;  %v204_v54 = vld [vmem:[#allocation13 + $0x190] sm:$0xff] }
 0x228   :  { %891 = vmatprep.subr.bf16.mxu1 %v3008_v48  ;;  %944 = vmatprep.subr.bf16.mxu0 %v3010_v19  ;;  %v3040_v19 = vcombine.high %v196_v28, %v200_v25  ;;  %v3042_v48 = vcombine.high %v197_v55, %v201_v44  ;;  %v3068_v39 = vcombine.low %v204_v54, %v208_v52 }
 0x229   :  { %917 = vmatprep.mubr.bf16.mxu1 %v3385_v59  ;;  %970 = vmatprep.mubr.bf16.mxu0 %v3385_v59 }
 0x22a   :  { %3396 = vst [vmem:[#allocation63_spill] sm:$0xff] %v3040_v19  ;;  %3397 = vst [vmem:[#allocation64_spill] sm:$0xff] %v3042_v48 }
 0x22b   :  { %892 = vmatpush1.bf16.msra.mxu1 %v3016_v2  ;;  %945 = vmatpush1.bf16.msra.mxu0 %v3018_v11  ;;  %v1127_v11 = vmul.f32 %v2960_v23, %v2856_v61  ;;  %v3055_v2 = vcombine.high %v204_v54, %v208_v52  ;;  %v3057_v23 = vcombine.high %v205_v53, %v209_v18 }
 0x22c   :  { %893 = vmatprep.subr.bf16.mxu1 %v3022_v62  ;;  %946 = vmatprep.subr.bf16.mxu0 %v3024_v51  ;;  %v3049_v62 = vcombine.low %v196_v28, %v200_v25  ;;  %v3051_v51 = vcombine.low %v197_v55, %v201_v44  ;;  %v1151_v25 = vmul.f32 %v1137_v0, %v2862_v3  ;;  %v216_v44 = vld [vmem:[#allocation13 + $0x1f0] sm:$0xff]  ;;  %v213_v55 = vld [vmem:[#allocation13 + $0x1d8] sm:$0xff] }
 0x22d   :  { %3399 = vst [vmem:[#allocation66_spill] sm:$0xff] %v3057_v23  ;;  %v1131_v43 = vadd.f32 %v2870_v16, %v1127_v11  ;;  %v217_v28 = vld [vmem:[#allocation13 + $0x1f8] sm:$0xff]  ;;  %v3070_v11 = vcombine.low %v205_v53, %v209_v18  ;;  %v3082_v54 = vcombine.low %v212_v4, %v216_v44 }
 0x22e   :  { %3398 = vst [vmem:[#allocation65_spill] sm:$0xff] %v3049_v62  ;;  %v3076_v0 = vcombine.high %v213_v55, %v217_v28  ;;  %v3084_v52 = vcombine.low %v213_v55, %v217_v28 }
 0x22f   :  { %894 = vmatpush1.bf16.msra.mxu1 %v3030_v1  ;;  %947 = vmatpush1.bf16.msra.mxu0 %v3032_v58  ;;  %v1152_v1 = vmul.f32 %v2972_v17, %v2862_v3  ;;  %v1132_v58 = vadd.f32 %v2870_v16, %v1128_v57  ;;  %v3074_v17 = vcombine.high %v212_v4, %v216_v44 }
 0x230   :  { %895 = vmatprep.subr.bf16.mxu1 %v3040_v19  ;;  %948 = vmatprep.subr.bf16.mxu0 %v3042_v48  ;;  %v3064_v19 = vpop.permute.xlu1 %1172  ;;  %v1165_v48 = vpop.permute.xlu0 %1164  ;;  %v1175_v57 = vmul.f32 %v1161_v49, %v2868_v8  ;;  %v1155_v26 = vadd.f32 %v1151_v25, %v1131_v43 }
 0x231   :  { %v1156_v63 = vadd.f32 %v1152_v1, %v1132_v58 }
 0x232   :  { %v1179_v43 = vadd.f32 %v1175_v57, %v1155_v26  ;;  %v2577_v57 = vmov 1983009808  }
 0x233   :  { %896 = vmatpush1.bf16.msra.mxu1 %v3049_v62  ;;  %949 = vmatpush1.bf16.msra.mxu0 %v3051_v51  ;;  %v1176_v62 = vmul.f32 %v1165_v48, %v2868_v8 }
 0x234   :  { %897 = vmatprep.subr.bf16.mxu1 %v3055_v2  ;;  %950 = vmatprep.subr.bf16.mxu0 %v3057_v23  ;;  %v1189_v53 = vpop.permute.xlu1 %1188  ;;  %v1185_v18 = vpop.permute.xlu0 %1184 }
 0x235   :  { %v1180_v23 = vadd.f32 %v1176_v62, %v1156_v63  ;;  %v1200_v49 = vmul.f32 %v1189_v53, %v2877_v22  ;;  %v1199_v48 = vmul.f32 %v1185_v18, %v2877_v22  ;;  %v3414_v62 = vld [vmem:[#allocation41_spill] sm:$0xff]  ;;  %v1615_v53 = vunpack.c.l.s4 %v2577_v57 }
 0x236   :  { %v3169_v57 = vld [vmem:[#allocation14] sm:$0xff] }
 0x237   :  { %898 = vmatpush1.bf16.msra.mxu1 %v3068_v39  ;;  %951 = vmatpush1.bf16.msra.mxu0 %v3070_v11  ;;  %v1204_v1 = vadd.f32 %v1200_v49, %v1180_v23  ;;  %v1203_v58 = vadd.f32 %v1199_v48, %v1179_v43 }
 0x238   :  { %899 = vmatprep.subr.bf16.mxu1 %v3074_v17  ;;  %952 = vmatprep.subr.bf16.mxu0 %v3076_v0 }
 0x239   :  { %v1208_v26 = vmax.f32 %v1204_v1, 0.0  ;;  %v1207_v63 = vmax.f32 %v1203_v58, 0.0 }
 0x23b   :  { %900 = vmatpush1.bf16.msra.mxu1 %v3082_v54  ;;  %953 = vmatpush1.bf16.msra.mxu0 %v3084_v52 }
 0x23c   :  { %2260 = vmatprep.subr.bf16.mxu1 %v2759_v6  ;;  %1268 = vmatprep.subr.bf16.mxu0 %v2799_v21  ;;  %v1129_v21 = vmul.f32 %v2962_v31, %v2856_v61  ;;  %v1193_v31 = vpop.permute.xlu1 %1192 }
 0x23e   :  { %918 = vmatmul.mubr.bf16.vlgmr.msra.gmra.mrb[8].mxu1 %v2976_v5  ;;  %971 = vmatmul.mubr.bf16.vlgmr.msra.gmra.mrb[12].mxu0 %v2976_v5  ;;  %v1211_v5 = vpack.c.bf16 %v1208_v26, %v1207_v63 }
 0x23f   :  { %2261 = vmatpush3.bf16.msra.mxu1 %v2759_v6  ;;  %927 = vmatprep.mubr.bf16.mxu1 %v3385_v59  ;;  %v1130_v6 = vmul.f32 %v2966_v36, %v2856_v61  ;;  %v1154_v61 = vmul.f32 %v3036_v40, %v2862_v3  ;;  %v3416_v40 = vld [vmem:[#allocation45_spill] sm:$0xff] }
 0x240   :  { %2262 = vmatprep.subr.bf16.mxu1 %v2763_v7  ;;  %980 = vmatprep.mubr.bf16.mxu0 %v3385_v59 }
 0x241   :  { %1269 = vmatpush1.bf16.msra.mxu0 %v2801_v24  ;;  %v1133_v24 = vadd.f32 %v2870_v16, %v1129_v21 }
 0x242   :  { %1270 = vmatprep.subr.bf16.mxu0 %v2808_v29  ;;  %v1134_v29 = vadd.f32 %v2870_v16, %v1130_v6  ;;  %v1616_v6 = vunpack.c.0.s8 %v1615_v53 }
 0x243   :  { %2263 = vmatpush3.bf16.msra.mxu1 %v2763_v7  ;;  %v1153_v7 = vmul.f32 %v2990_v60, %v2862_v3  ;;  %v1178_v3 = vmul.f32 %v3064_v19, %v2868_v8  ;;  %v3411_v19 = vld [vmem:[#allocation37_spill] sm:$0xff]  ;;  %v3413_v60 = vld [vmem:[#allocation38_spill] sm:$0xff] }
 0x244   :  { %2264 = vmatprep.subr.bf16.mxu1 %v2769_v9  ;;  %v1158_v16 = vadd.f32 %v1154_v61, %v1134_v29 }
 0x245   :  { %1271 = vmatpush1.bf16.msra.mxu0 %v2814_v33  ;;  %v1177_v33 = vmul.f32 %v3034_v56, %v2868_v8  ;;  %v3415_v56 = vld [vmem:[#allocation40_spill] sm:$0xff] }
 0x246   :  { %928 = vmatmul.mubr.bf16.gmra.mrb[12].mxu1 %v2974_v32  ;;  %981 = vmatmul.mubr.bf16.gmra.mrb[16].mxu0 %v2974_v32  ;;  %v3412_v32 = vld [vmem:[#allocation39_spill] sm:$0xff] }
 0x247   :  { %2265 = vmatpush3.bf16.msra.mxu1 %v2769_v9  ;;  %2276 = vmatprep.mubr.bf16.mxu1 %v1211_v5  ;;  %v1157_v9 = vadd.f32 %v1153_v7, %v1133_v24 }
 0x248   :  { %2266 = vmatprep.subr.bf16.mxu1 %v2773_v10  ;;  %1272 = vmatprep.subr.bf16.mxu0 %v2817_v34  ;;  %v1197_v34 = vpop.permute.xlu0 %1196 }
 0x249   :  { %1273 = vmatpush1.bf16.msra.mxu0 %v2820_v37  ;;  %1300 = vmatprep.mubr.bf16.mxu0 %v3385_v59  ;;  %v1181_v37 = vadd.f32 %v1177_v33, %v1157_v9  ;;  %v1202_v36 = vmul.f32 %v1197_v34, %v2877_v22 }
 0x24a   :  { %1274 = vmatprep.subr.bf16.mxu0 %v2823_v38  ;;  %v1201_v38 = vmul.f32 %v1193_v31, %v2877_v22  ;;  %v3404_v22 = vld [vmem:[#allocation30_spill] sm:$0xff] }
 0x24b   :  { %2267 = vmatpush3.bf16.msra.mxu1 %v2773_v10  ;;  %v1182_v10 = vadd.f32 %v1178_v3, %v1158_v16 }
 0x24c   :  { %2268 = vmatprep.subr.bf16.mxu1 %v2778_v12  ;;  %v1205_v8 = vadd.f32 %v1201_v38, %v1181_v37 }
 0x24d   :  { %1275 = vmatpush1.bf16.msra.mxu0 %v2827_v41  ;;  %v1206_v41 = vadd.f32 %v1202_v36, %v1182_v10  ;;  %v3417_v10 = vld [vmem:[#allocation27_spill] sm:$0xff] }
 0x24e   :  { %1276 = vmatprep.subr.bf16.mxu0 %v2831_v42  ;;  %v3167_v38 = vsub.s32 %v1616_v6, %v3417_v10 }
 0x24f   :  { %2269 = vmatpush3.bf16.msra.mxu1 %v2778_v12  ;;  %v1209_v12 = vmax.f32 %v1205_v8, 0.0  ;;  %v1210_v42 = vmax.f32 %v1206_v41, 0.0 }
 0x250   :  { %2270 = vmatprep.subr.bf16.mxu1 %v2782_v13 }
 0x251   :  { %1277 = vmatpush1.bf16.msra.mxu0 %v2835_v45  ;;  %v3400_v45 = vld [vmem:[#allocation42_spill] sm:$0xff] }
 0x252   :  { %1278 = vmatprep.subr.bf16.mxu0 %v2838_v46  ;;  %v3401_v46 = vld [vmem:[#allocation26_spill] sm:$0xff] }
 0x253   :  { %2271 = vmatpush3.bf16.msra.mxu1 %v2782_v13  ;;  %v1212_v13 = vpack.c.bf16 %v1210_v42, %v1209_v12 }
 0x254   :  { %2272 = vmatprep.subr.bf16.mxu1 %v2788_v14 }
 0x255   :  { %1279 = vmatpush1.bf16.msra.mxu0 %v2843_v47  ;;  %v3403_v47 = vld [vmem:[#allocation29_spill] sm:$0xff] }
 0x256   :  { %1280 = vmatprep.subr.bf16.mxu0 %v2926_v20  ;;  %v3405_v20 = vld [vmem:[#allocation31_spill] sm:$0xff] }
 0x257   :  { %2273 = vmatpush3.bf16.msra.mxu1 %v2788_v14  ;;  %v3402_v14 = vld [vmem:[#allocation28_spill] sm:$0xff] }
 0x258   :  { %2274 = vmatprep.subr.bf16.mxu1 %v2792_v15 }
 0x259   :  { %1281 = vmatpush1.bf16.msra.mxu0 %v2932_v30  ;;  %v3408_v30 = vld [vmem:[#allocation34_spill] sm:$0xff] }
 0x25a   :  { %1282 = vmatprep.subr.bf16.mxu0 %v2938_v35  ;;  %v3409_v35 = vld [vmem:[#allocation35_spill] sm:$0xff] }
 0x25b   :  { %2275 = vmatpush3.bf16.msra.mxu1 %v2792_v15  ;;  %v3406_v15 = vld [vmem:[#allocation32_spill] sm:$0xff] }
 0x25c   :  { %1321 = vmatprep.subr.bf16.mxu1 %v2805_v27  ;;  %v3407_v27 = vld [vmem:[#allocation33_spill] sm:$0xff] }
 0x25d   :  { %1283 = vmatpush1.bf16.msra.mxu0 %v2944_v50  ;;  %v3410_v50 = vld [vmem:[#allocation36_spill] sm:$0xff] }
 0x25e   :  { %2277 = vmatmul.mubr.bf16.vlgmr.msra.gmra.mrb[16].mxu1 %v1212_v13  ;;  %1374 = vmatprep.subr.bf16.mxu0 %v3400_v45 }
 0x25f   :  { %1322 = vmatpush1.bf16.msra.mxu1 %v3401_v46  ;;  %1353 = vmatprep.mubr.bf16.mxu1 %v3385_v59 }
 0x260   :  { %1323 = vmatprep.subr.bf16.mxu1 %v3402_v14 }
 0x263   :  { %1324 = vmatpush1.bf16.msra.mxu1 %v3403_v47 }
 0x264   :  { %1325 = vmatprep.subr.bf16.mxu1 %v3404_v22 }
 0x267   :  { %1326 = vmatpush1.bf16.msra.mxu1 %v3405_v20 }
 0x268   :  { %1327 = vmatprep.subr.bf16.mxu1 %v3406_v15 }
 0x26b   :  { %1328 = vmatpush1.bf16.msra.mxu1 %v3407_v27 }
 0x26c   :  { %1329 = vmatprep.subr.bf16.mxu1 %v3408_v30 }
 0x26f   :  { %1330 = vmatpush1.bf16.msra.mxu1 %v3409_v35 }
 0x270   :  { %1331 = vmatprep.subr.bf16.mxu1 %v3410_v50 }
 0x273   :  { %1332 = vmatpush1.bf16.msra.mxu1 %v3411_v19 }
 0x274   :  { %1333 = vmatprep.subr.bf16.mxu1 %v3412_v32 }
 0x277   :  { %1334 = vmatpush1.bf16.msra.mxu1 %v3413_v60 }
 0x278   :  { %1335 = vmatprep.subr.bf16.mxu1 %v3414_v62 }
 0x27b   :  { %1336 = vmatpush1.bf16.msra.mxu1 %v3415_v56 }
 0x27c   :  { %1427 = vmatprep.subr.bf16.mxu1 %v3416_v40 }
 0x2f1   :  { %v813_v23 = vpop.f32.mrb[0].mxu1  ;;  %v866_v4 = vpop.f32.mrb[4].mxu0 }
 0x2f2   :  { %v815_v25 = vpop.f32.mrb[1].mxu1  ;;  %v868_v44 = vpop.f32.mrb[5].mxu0 }
 0x2f3   :  { %v817_v55 = vpop.f32.mrb[2].mxu1  ;;  %v870_v28 = vpop.f32.mrb[6].mxu0 }
 0x2f4   :  { %v991_v18 = vmax.f32 %v813_v23, %v817_v55  ;;  %v1005_v49 = vmax.f32 %v866_v4, %v870_v28  ;;  %v819_v43 = vpop.f32.mrb[3].mxu1  ;;  %v872_v48 = vpop.f32.mrb[7].mxu0 }
 0x2f5   :  { %v998_v1 = vmax.f32 %v815_v25, %v819_v43  ;;  %v1012_v58 = vmax.f32 %v868_v44, %v872_v48 }
 0x2f6   :  { %v992_v26 = vrot.slane %v991_v18, 4  ;;  %v1006_v63 = vrot.slane %v1005_v49, 4 }
 0x2f7   :  { %v999_v21 = vrot.slane %v998_v1, 4  ;;  %v1013_v5 = vrot.slane %v1012_v58, 4 }
 0x2f8   :  { %v993_v24 = vmax.f32 %v991_v18, %v992_v26  ;;  %v1007_v29 = vmax.f32 %v1005_v49, %v1006_v63  ;;  %v3418_v63 = vsub.s32 0, %v3417_v10 }
 0x2f9   :  { %v1000_v7 = vmax.f32 %v998_v1, %v999_v21  ;;  %v1014_v61 = vmax.f32 %v1012_v58, %v1013_v5  ;;  %v823_v9 = vpop.f32.mrb[4].mxu1  ;;  %v876_v33 = vpop.f32.mrb[8].mxu0 }
 0x2fa   :  { %v994_v16 = vrot.slane %v993_v24, 2  ;;  %v1008_v3 = vrot.slane %v1007_v29, 2  ;;  %v825_v31 = vpop.f32.mrb[5].mxu1  ;;  %v878_v34 = vpop.f32.mrb[9].mxu0  ;;  %v2038_v21 = vrot.slane %v3169_v57, %v3418_v63 }
 0x2fb   :  { %v1001_v37 = vrot.slane %v1000_v7, 2  ;;  %v1015_v36 = vrot.slane %v1014_v61, 2  ;;  %v827_v8 = vpop.f32.mrb[6].mxu1  ;;  %v880_v41 = vpop.f32.mrb[10].mxu0 }
 0x2fc   :  { %v995_v12 = vmax.f32 %v993_v24, %v994_v16  ;;  %v1009_v42 = vmax.f32 %v1007_v29, %v1008_v3  ;;  %v1047_v13 = vmax.f32 %v823_v9, %v827_v8  ;;  %v1061_v45 = vmax.f32 %v876_v33, %v880_v41  ;;  %v829_v46 = vpop.f32.mrb[7].mxu1  ;;  %v882_v14 = vpop.f32.mrb[11].mxu0 }
 0x2fd   :  { %v1002_v47 = vmax.f32 %v1000_v7, %v1001_v37  ;;  %v1016_v22 = vmax.f32 %v1014_v61, %v1015_v36  ;;  %v1054_v20 = vmax.f32 %v825_v31, %v829_v46  ;;  %v1068_v15 = vmax.f32 %v878_v34, %v882_v14 }
 0x2fe   :  { %v996_v27 = vrot.slane %v995_v12, 1  ;;  %v1010_v30 = vrot.slane %v1009_v42, 1  ;;  %v1048_v35 = vrot.slane %v1047_v13, 4  ;;  %v1062_v50 = vrot.slane %v1061_v45, 4 }
 0x2ff   :  { %v1003_v19 = vrot.slane %v1002_v47, 1  ;;  %v1017_v32 = vrot.slane %v1016_v22, 1  ;;  %v1055_v60 = vrot.slane %v1054_v20, 4  ;;  %v1069_v62 = vrot.slane %v1068_v15, 4 }
 0x300   :  { %v997_v56 = vmax.f32 %v995_v12, %v996_v27  ;;  %v1011_v40 = vmax.f32 %v1009_v42, %v1010_v30  ;;  %v1049_v23 = vmax.f32 %v1047_v13, %v1048_v35  ;;  %v1063_v4 = vmax.f32 %v1061_v45, %v1062_v50 }
 0x301   :  { %v1004_v25 = vmax.f32 %v1002_v47, %v1003_v19  ;;  %v1018_v44 = vmax.f32 %v1016_v22, %v1017_v32  ;;  %v1056_v55 = vmax.f32 %v1054_v20, %v1055_v60  ;;  %v1070_v28 = vmax.f32 %v1068_v15, %v1069_v62 }
 0x302   :  { %v1050_v53 = vrot.slane %v1049_v23, 2  ;;  %v1064_v18 = vrot.slane %v1063_v4, 2  ;;  %v3419_v9 = vsub.s32 1, %v3417_v10  ;;  %v3420_v16 = vsub.s32 2, %v3417_v10 }
 0x303   :  { %v1612_v49 = vcombine.low %v997_v56, %v1004_v25  ;;  %v1613_v43 = vcombine.low %v1011_v40, %v1018_v44  ;;  %v1057_v48 = vrot.slane %v1056_v55, 2  ;;  %v1071_v1 = vrot.slane %v1070_v28, 2 }
 0x304   :  { %v1051_v58 = vmax.f32 %v1049_v23, %v1050_v53  ;;  %v1065_v26 = vmax.f32 %v1063_v4, %v1064_v18  ;;  %v2042_v33 = vrot.slane %v3169_v57, %v3419_v9  ;;  %v2046_v3 = vrot.slane %v3169_v57, %v3420_v16 }
 0x305   :  { %v1620_v6 = vrot.slane %v1612_v49, %v3167_v38  ;;  %v1627_v5 = vrot.slane %v1613_v43, %v3167_v38  ;;  %v1058_v24 = vmax.f32 %v1056_v55, %v1057_v48  ;;  %v1072_v29 = vmax.f32 %v1070_v28, %v1071_v1 }
 0x306   :  { %v1052_v7 = vrot.slane %v1051_v58, 1  ;;  %v1066_v61 = vrot.slane %v1065_v26, 1  ;;  %v3421_v36 = vsub.s32 3, %v3417_v10  ;;  %v2067_v14 = vcombine.low %v2038_v21, %v2042_v33 }
 0x307   :  { %v1628_v31 = vcombine.low %v1620_v6, %v1627_v5  ;;  %v1059_v34 = vrot.slane %v1058_v24, 1  ;;  %v1073_v37 = vrot.slane %v1072_v29, 1 }
 0x308   :  { %v2050_v8 = vrot.slane %v3169_v57, %v3421_v36  ;;  %v1053_v41 = vmax.f32 %v1051_v58, %v1052_v7  ;;  %v1067_v12 = vmax.f32 %v1065_v26, %v1066_v61  ;;  %v2075_v27 = vrot.slane %v2067_v14, %v3167_v38 }
 0x309   :  { %v1060_v42 = vmax.f32 %v1058_v24, %v1059_v34  ;;  %v1074_v13 = vmax.f32 %v1072_v29, %v1073_v37  ;;  %v2053_v36 = vsub.s32 4, %v3417_v10 }
 0x30a   :  { %v2068_v47 = vcombine.low %v2046_v3, %v2050_v8  ;;  %v2057_v8 = vsub.s32 5, %v3417_v10 }
 0x30b   :  { %v1646_v45 = vcombine.low %v1053_v41, %v1060_v42  ;;  %v1647_v46 = vcombine.low %v1067_v12, %v1074_v13 }
 0x30c   :  { %v2082_v30 = vrot.slane %v2068_v47, %v3167_v38 }
 0x30d   :  { %v1654_v22 = vrot.slane %v1646_v45, %v3167_v38  ;;  %v1661_v20 = vrot.slane %v1647_v46, %v3167_v38 }
 0x30e   :  { %v3190_v23 = vcombine.low %v2075_v27, %v2082_v30 }
 0x30f   :  { %v1662_v15 = vcombine.low %v1654_v22, %v1661_v20 }
 0x311   :  { %v1684_v35 = vrot.slane %v1662_v15, 7  ;;  %v919_v50 = vpop.f32.mrb[8].mxu1  ;;  %v972_v19 = vpop.f32.mrb[12].mxu0 }
 0x312   :  { %v921_v32 = vpop.f32.mrb[9].mxu1  ;;  %v974_v60 = vpop.f32.mrb[13].mxu0 }
 0x313   :  { %v923_v62 = vpop.f32.mrb[10].mxu1  ;;  %v976_v56 = vpop.f32.mrb[14].mxu0  ;;  %v1686_v40 = vsel %vm1685_vm0, %v1684_v35, %v1628_v31 }
 0x314   :  { %v1019_v4 = vmax.f32 %v919_v50, %v923_v62  ;;  %v1033_v25 = vmax.f32 %v972_v19, %v976_v56  ;;  %v925_v44 = vpop.f32.mrb[11].mxu1  ;;  %v978_v55 = vpop.f32.mrb[15].mxu0  ;;  %v1688_v28 = vsel %vm1687_vm1, %v1684_v35, %v1686_v40 }
 0x315   :  { %v1026_v53 = vmax.f32 %v921_v32, %v925_v44  ;;  %v1040_v18 = vmax.f32 %v974_v60, %v978_v55  ;;  %v1690_v49 = vsel %vm1689_vm2, %v1684_v35, %v1688_v28 }
 0x316   :  { %v1020_v43 = vrot.slane %v1019_v4, 4  ;;  %v1034_v48 = vrot.slane %v1033_v25, 4  ;;  %v1692_v1 = vsel %vm1691_vm3, %v1684_v35, %v1690_v49  ;;  %v2061_v49 = vsub.s32 6, %v3417_v10 }
 0x317   :  { %v1027_v58 = vrot.slane %v1026_v53, 4  ;;  %v1041_v26 = vrot.slane %v1040_v18, 4  ;;  %v2103_v63 = vadd.f32 %v3190_v23, %v1692_v1 }
 0x318   :  { %v1021_v21 = vmax.f32 %v1019_v4, %v1020_v43  ;;  %v1035_v6 = vmax.f32 %v1033_v25, %v1034_v48  ;;  %v2065_v43 = vsub.s32 7, %v3417_v10  ;;  %v2062_v10 = vrot.slane %v3169_v57, %v2061_v49 }
 0x319   :  { %v1028_v5 = vmax.f32 %v1026_v53, %v1027_v58  ;;  %v1042_v24 = vmax.f32 %v1040_v18, %v1041_v26  ;;  %v929_v29 = vpop.f32.mrb[12].mxu1  ;;  %v982_v7 = vpop.f32.mrb[16].mxu0  ;;  %2105 = vst [vmem:[#allocation16] sm:$0xff] %v2103_v63 }
 0x31a   :  { %v1022_v61 = vrot.slane %v1021_v21, 2  ;;  %v1036_v9 = vrot.slane %v1035_v6, 2  ;;  %v931_v33 = vpop.f32.mrb[13].mxu1  ;;  %v984_v16 = vpop.f32.mrb[17].mxu0 }
 0x31b   :  { %v1029_v3 = vrot.slane %v1028_v5, 2  ;;  %v1043_v31 = vrot.slane %v1042_v24, 2  ;;  %v933_v34 = vpop.f32.mrb[14].mxu1  ;;  %v986_v37 = vpop.f32.mrb[18].mxu0 }
 0x31c   :  { %v1023_v41 = vmax.f32 %v1021_v21, %v1022_v61  ;;  %v1037_v12 = vmax.f32 %v1035_v6, %v1036_v9  ;;  %v1075_v42 = vmax.f32 %v929_v29, %v933_v34  ;;  %v1089_v13 = vmax.f32 %v982_v7, %v986_v37  ;;  %v935_v45 = vpop.f32.mrb[15].mxu1  ;;  %v988_v46 = vpop.f32.mrb[19].mxu0 }
 0x31d   :  { %v1030_v14 = vmax.f32 %v1028_v5, %v1029_v3  ;;  %v1044_v47 = vmax.f32 %v1042_v24, %v1043_v31  ;;  %v1082_v22 = vmax.f32 %v931_v33, %v935_v45  ;;  %v1096_v20 = vmax.f32 %v984_v16, %v988_v46 }
 0x31e   :  { %v1024_v15 = vrot.slane %v1023_v41, 1  ;;  %v1038_v27 = vrot.slane %v1037_v12, 1  ;;  %v1076_v30 = vrot.slane %v1075_v42, 4  ;;  %v1090_v35 = vrot.slane %v1089_v13, 4 }
 0x31f   :  { %v1031_v50 = vrot.slane %v1030_v14, 1  ;;  %v1045_v19 = vrot.slane %v1044_v47, 1  ;;  %v1083_v32 = vrot.slane %v1082_v22, 4  ;;  %v1097_v60 = vrot.slane %v1096_v20, 4 }
 0x320   :  { %v1025_v62 = vmax.f32 %v1023_v41, %v1024_v15  ;;  %v1039_v56 = vmax.f32 %v1037_v12, %v1038_v27  ;;  %v1077_v40 = vmax.f32 %v1075_v42, %v1076_v30  ;;  %v1091_v4 = vmax.f32 %v1089_v13, %v1090_v35 }
 0x321   :  { %v1032_v25 = vmax.f32 %v1030_v14, %v1031_v50  ;;  %v1046_v44 = vmax.f32 %v1044_v47, %v1045_v19  ;;  %v1084_v55 = vmax.f32 %v1082_v22, %v1083_v32  ;;  %v1098_v28 = vmax.f32 %v1096_v20, %v1097_v60 }
 0x322   :  { %v1078_v53 = vrot.slane %v1077_v40, 2  ;;  %v1092_v18 = vrot.slane %v1091_v4, 2  ;;  %v2054_v6 = vrot.slane %v3169_v57, %v2053_v36  ;;  %v2058_v33 = vrot.slane %v3169_v57, %v2057_v8 }
 0x323   :  { %v1629_v48 = vcombine.low %v1025_v62, %v1032_v25  ;;  %v1630_v1 = vcombine.low %v1039_v56, %v1046_v44  ;;  %v1085_v58 = vrot.slane %v1084_v55, 2  ;;  %v1099_v26 = vrot.slane %v1098_v28, 2 }
 0x324   :  { %v1079_v63 = vmax.f32 %v1077_v40, %v1078_v53  ;;  %v1093_v21 = vmax.f32 %v1091_v4, %v1092_v18  ;;  %v2066_v34 = vrot.slane %v3169_v57, %v2065_v43  ;;  %v2084_v45 = vcombine.low %v2054_v6, %v2058_v33  ;;  %v3422_v57 = vld [vmem:[#allocation46_spill] sm:$0xff]  ;;  %v3435_v33 = vld [vmem:[#allocation57_spill] sm:$0xff] }
 0x325   :  { %v1637_v5 = vrot.slane %v1629_v48, %v3167_v38  ;;  %v1644_v24 = vrot.slane %v1630_v1, %v3167_v38  ;;  %v1086_v29 = vmax.f32 %v1084_v55, %v1085_v58  ;;  %v1100_v7 = vmax.f32 %v1098_v28, %v1099_v26  ;;  %v3423_v1 = vld [vmem:[#allocation43_spill] sm:$0xff]  ;;  %v3424_v58 = vld [vmem:[#allocation44_spill] sm:$0xff]  ;;  %v3428_v6 = vld [vmem:[#allocation50_spill] sm:$0xff] }
 0x326   :  { %v1080_v61 = vrot.slane %v1079_v63, 1  ;;  %v1094_v9 = vrot.slane %v1093_v21, 1  ;;  %v2085_v46 = vcombine.low %v2062_v10, %v2066_v34  ;;  %v2092_v22 = vrot.slane %v2084_v45, %v3167_v38  ;;  %v3425_v26 = vld [vmem:[#allocation47_spill] sm:$0xff]  ;;  %v3436_v10 = vld [vmem:[#allocation58_spill] sm:$0xff] }
 0x327   :  { %v1645_v16 = vcombine.low %v1637_v5, %v1644_v24  ;;  %v1087_v3 = vrot.slane %v1086_v29, 1  ;;  %v1101_v31 = vrot.slane %v1100_v7, 1  ;;  %v3429_v5 = vld [vmem:[#allocation51_spill] sm:$0xff]  ;;  %v3430_v24 = vld [vmem:[#allocation52_spill] sm:$0xff]  ;;  %v3440_v34 = vld [vmem:[#allocation62_spill] sm:$0xff] }
 0x328   :  { %v1081_v37 = vmax.f32 %v1079_v63, %v1080_v61  ;;  %v1095_v41 = vmax.f32 %v1093_v21, %v1094_v9  ;;  %v2099_v20 = vrot.slane %v2085_v46, %v3167_v38  ;;  %v3426_v63 = vld [vmem:[#allocation48_spill] sm:$0xff]  ;;  %v3427_v21 = vld [vmem:[#allocation49_spill] sm:$0xff]  ;;  %v3433_v61 = vld [vmem:[#allocation55_spill] sm:$0xff] }
 0x329   :  { %v1088_v36 = vmax.f32 %v1086_v29, %v1087_v3  ;;  %v1102_v12 = vmax.f32 %v1100_v7, %v1101_v31  ;;  %v3431_v29 = vld [vmem:[#allocation53_spill] sm:$0xff]  ;;  %v3432_v7 = vld [vmem:[#allocation54_spill] sm:$0xff]  ;;  %v3434_v9 = vld [vmem:[#allocation56_spill] sm:$0xff] }
 0x32a   :  { %v3213_v60 = vcombine.low %v2092_v22, %v2099_v20  ;;  %v3438_v3 = vld [vmem:[#allocation60_spill] sm:$0xff]  ;;  %v3439_v31 = vld [vmem:[#allocation61_spill] sm:$0xff] }
 0x32b   :  { %v1663_v42 = vcombine.low %v1081_v37, %v1088_v36  ;;  %v1664_v13 = vcombine.low %v1095_v41, %v1102_v12  ;;  %v3441_v37 = vld [vmem:[#allocation63_spill] sm:$0xff]  ;;  %v3442_v41 = vld [vmem:[#allocation64_spill] sm:$0xff]  ;;  %v3443_v36 = vld [vmem:[#allocation65_spill] sm:$0xff] }
 0x32c   :  { %v3444_v12 = vld [vmem:[#allocation66_spill] sm:$0xff] }
 0x32d   :  { %v1671_v14 = vrot.slane %v1663_v42, %v3167_v38  ;;  %v1678_v47 = vrot.slane %v1664_v13, %v3167_v38 }
 0x32f   :  { %v1679_v8 = vcombine.low %v1671_v14, %v1678_v47 }
 0x331   :  { %v1695_v15 = vrot.slane %v1679_v8, 7  ;;  %v2278_v27 = vpop.f32.mrb[16].mxu1 }
 0x332   :  { %v1256_v30 = vadd.f32 %v2278_v27, %v3422_v57  ;;  %v1247_v35 = vpop.f32.mrb[17].mxu1 }
 0x333   :  { %v1248_v50 = vadd.f32 %v3422_v57, %v1247_v35  ;;  %v2279_v19 = vpop.f32.mrb[18].mxu1  ;;  %v1696_v32 = vsel %vm1685_vm0, %v1695_v15, %v1645_v16  ;;  %v3437_v16 = vld [vmem:[#allocation59_spill] sm:$0xff] }
 0x334   :  { %v1259_v62 = vadd.f32 %v2279_v19, %v3422_v57  ;;  %v1250_v56 = vpop.f32.mrb[19].mxu1  ;;  %v1697_v40 = vsel %vm1687_vm1, %v1695_v15, %v1696_v32  ;;  %v1264_v44 = vmax.f32 %v1256_v30, 0.0 }
 0x335   :  { %v1251_v4 = vadd.f32 %v3422_v57, %v1250_v56  ;;  %v1698_v25 = vsel %vm1689_vm2, %v1695_v15, %v1697_v40  ;;  %v1262_v53 = vmax.f32 %v1248_v50, 0.0 }
 0x336   :  { %v1265_v55 = vmax.f32 %v1259_v62, 0.0  ;;  %v1699_v28 = vsel %vm1691_vm3, %v1695_v15, %v1698_v25 }
 0x337   :  { %v1263_v18 = vmax.f32 %v1251_v4, 0.0  ;;  %v2104_v49 = vadd.f32 %v3213_v60, %v1699_v28 }
 0x338   :  { %v1267_v43 = vpack.c.bf16 %v1265_v55, %v1264_v44 }
 0x339   :  { %v1266_v48 = vpack.c.bf16 %v1263_v18, %v1262_v53  ;;  %2106 = vst [vmem:[#allocation16 + $0x8] sm:$0xff] %v2104_v49 }
 0x33b   :  { %1301 = vmatmul.mubr.bf16.vlgmr.msra.gmra.mrb[20].mxu0 %v1266_v48  ;;  %1354 = vmatmul.mubr.bf16.vlgmr.msra.gmra.mrb[20].mxu1 %v1266_v48 }
 0x33c   :  { %1375 = vmatpush1.bf16.msra.mxu0 %v3423_v1  ;;  %1428 = vmatpush1.bf16.msra.mxu1 %v3424_v58 }
 0x33d   :  { %1376 = vmatprep.subr.bf16.mxu0 %v3425_v26  ;;  %1429 = vmatprep.subr.bf16.mxu1 %v3426_v63 }
 0x33e   :  { %1310 = vmatprep.mubr.bf16.mxu0 %v3385_v59  ;;  %1363 = vmatprep.mubr.bf16.mxu1 %v3385_v59 }
 0x340   :  { %1377 = vmatpush1.bf16.msra.mxu0 %v3427_v21  ;;  %1430 = vmatpush1.bf16.msra.mxu1 %v3428_v6 }
 0x341   :  { %1378 = vmatprep.subr.bf16.mxu0 %v3429_v5  ;;  %1431 = vmatprep.subr.bf16.mxu1 %v3430_v24 }
 0x343   :  { %1311 = vmatmul.mubr.bf16.gmra.mrb[24].mxu0 %v1267_v43  ;;  %1364 = vmatmul.mubr.bf16.gmra.mrb[24].mxu1 %v1267_v43 }
 0x344   :  { %1379 = vmatpush1.bf16.msra.mxu0 %v3431_v29  ;;  %1432 = vmatpush1.bf16.msra.mxu1 %v3432_v7 }
 0x345   :  { %1380 = vmatprep.subr.bf16.mxu0 %v3433_v61  ;;  %1433 = vmatprep.subr.bf16.mxu1 %v3434_v9 }
 0x346   :  { %1406 = vmatprep.mubr.bf16.mxu0 %v3385_v59  ;;  %1459 = vmatprep.mubr.bf16.mxu1 %v3385_v59 }
 0x348   :  { %1381 = vmatpush1.bf16.msra.mxu0 %v3435_v33  ;;  %1434 = vmatpush1.bf16.msra.mxu1 %v3436_v10 }
 0x349   :  { %1382 = vmatprep.subr.bf16.mxu0 %v3437_v16  ;;  %1435 = vmatprep.subr.bf16.mxu1 %v3438_v3 }
 0x34c   :  { %1383 = vmatpush1.bf16.msra.mxu0 %v3439_v31  ;;  %1436 = vmatpush1.bf16.msra.mxu1 %v3440_v34 }
 0x34d   :  { %1384 = vmatprep.subr.bf16.mxu0 %v3441_v37  ;;  %1437 = vmatprep.subr.bf16.mxu1 %v3442_v41 }
 0x350   :  { %1385 = vmatpush1.bf16.msra.mxu0 %v3443_v36  ;;  %1438 = vmatpush1.bf16.msra.mxu1 %v3051_v51 }
 0x351   :  { %1386 = vmatprep.subr.bf16.mxu0 %v3055_v2  ;;  %1439 = vmatprep.subr.bf16.mxu1 %v3444_v12 }
 0x354   :  { %1387 = vmatpush1.bf16.msra.mxu0 %v3068_v39  ;;  %1440 = vmatpush1.bf16.msra.mxu1 %v3070_v11 }
 0x355   :  { %1388 = vmatprep.subr.bf16.mxu0 %v3074_v17  ;;  %1441 = vmatprep.subr.bf16.mxu1 %v3076_v0 }
 0x358   :  { %1389 = vmatpush1.bf16.msra.mxu0 %v3082_v54  ;;  %1442 = vmatpush1.bf16.msra.mxu1 %v3084_v52 }
 0x35b   :  { %1407 = vmatmul.mubr.bf16.vlgmr.msra.gmra.mrb[28].mxu0 %v1266_v48  ;;  %1460 = vmatmul.mubr.bf16.vlgmr.msra.gmra.mrb[28].mxu1 %v1266_v48 }
 0x35c   :  { %1416 = vmatprep.mubr.bf16.mxu0 %v3385_v59  ;;  %1469 = vmatprep.mubr.bf16.mxu1 %v3385_v59 }
 0x363   :  { %1417 = vmatmul.mubr.bf16.gmra.mrb[32].mxu0 %v1267_v43  ;;  %1470 = vmatmul.mubr.bf16.gmra.mrb[32].mxu1 %v1267_v43 }
 0x364   :  { %2512 = shalt.err (!%p2509_p12)
}
 0x365   :  { %s2513_s23 = scalar_lea.hbm %s3307_s8, 256 }
 0x366   :  { %p2514_p13 = scmp.ne.s32.totalorder %s3307_s8, %s2513_s23  ;;  %p2517_p0 = scmp.lt.u32.totalorder %s2513_s23, %s3307_s8 }
 0x368   :  { %p2519_p1 = pnand %p2517_p0, %p2514_p13 }
 0x36a   :  { %2522 = shalt.err (!%p2519_p1)
}
 0x36b   :  { %2122 = dma.vmem_to_hbm [thread:$0]  %s2120_s5, 256, %s3307_s8, [#allocation4]  }
 0x36c   :  { %s2579_s8 = smov [#allocation17]  }
 0x36d   :  { %s2129_s29 = sshll.u32 %s2579_s8, 4  ;;  %s2130_s29 = int_to_ptr.vmem [resolvable:$true] %s2129_s29 }
 0x36e   :  { %s2523_s4 = scalar_lea.vmem %s2130_s29, 256  ;;  %p2528_p3 = scmp.lt.s32.totalorder %s2130_s29, %s2130_s29 }
 0x36f   :  { %p2524_p2 = scmp.ne.s32.totalorder %s2130_s29, %s2523_s4  ;;  %p2529_p4 = scmp.lt.s32.totalorder %s2523_s4, %s2523_s4 }
 0x371   :  { %p2530_p5 = por %p2529_p4, %p2528_p3 }
 0x373   :  { %p2531_p6 = pnand %p2530_p5, %p2524_p2 }
 0x40e   :  { %v1302_v39 = vpop.f32.mrb[20].mxu0  ;;  %v1355_v59 = vpop.f32.mrb[20].mxu1 }
 0x40f   :  { %v1304_v2 = vpop.f32.mrb[21].mxu0  ;;  %v1357_v51 = vpop.f32.mrb[21].mxu1 }
 0x410   :  { %v1306_v11 = vpop.f32.mrb[22].mxu0  ;;  %v1359_v17 = vpop.f32.mrb[22].mxu1 }
 0x411   :  { %v1480_v0 = vmax.f32 %v1302_v39, %v1306_v11  ;;  %v1494_v54 = vmax.f32 %v1355_v59, %v1359_v17  ;;  %v1308_v52 = vpop.f32.mrb[23].mxu0  ;;  %v1361_v42 = vpop.f32.mrb[23].mxu1 }
 0x412   :  { %v1487_v13 = vmax.f32 %v1304_v2, %v1308_v52  ;;  %v1501_v45 = vmax.f32 %v1357_v51, %v1361_v42 }
 0x413   :  { %v1481_v46 = vrot.slane %v1480_v0, 4  ;;  %v1495_v14 = vrot.slane %v1494_v54, 4 }
 0x414   :  { %v1488_v47 = vrot.slane %v1487_v13, 4  ;;  %v1502_v8 = vrot.slane %v1501_v45, 4 }
 0x415   :  { %v1482_v22 = vmax.f32 %v1480_v0, %v1481_v46  ;;  %v1496_v20 = vmax.f32 %v1494_v54, %v1495_v14 }
 0x416   :  { %v1489_v15 = vmax.f32 %v1487_v13, %v1488_v47  ;;  %v1503_v27 = vmax.f32 %v1501_v45, %v1502_v8  ;;  %v1312_v57 = vpop.f32.mrb[24].mxu0  ;;  %v1365_v30 = vpop.f32.mrb[24].mxu1 }
 0x417   :  { %v1483_v35 = vrot.slane %v1482_v22, 2  ;;  %v1497_v50 = vrot.slane %v1496_v20, 2  ;;  %v1314_v19 = vpop.f32.mrb[25].mxu0  ;;  %v1367_v32 = vpop.f32.mrb[25].mxu1 }
 0x418   :  { %v1490_v62 = vrot.slane %v1489_v15, 2  ;;  %v1504_v56 = vrot.slane %v1503_v27, 2  ;;  %v1316_v40 = vpop.f32.mrb[26].mxu0  ;;  %v1369_v4 = vpop.f32.mrb[26].mxu1 }
 0x419   :  { %v1484_v25 = vmax.f32 %v1482_v22, %v1483_v35  ;;  %v1498_v44 = vmax.f32 %v1496_v20, %v1497_v50  ;;  %v1536_v55 = vmax.f32 %v1312_v57, %v1316_v40  ;;  %v1550_v28 = vmax.f32 %v1365_v30, %v1369_v4  ;;  %v1318_v53 = vpop.f32.mrb[27].mxu0  ;;  %v1371_v18 = vpop.f32.mrb[27].mxu1 }
 0x41a   :  { %v1491_v49 = vmax.f32 %v1489_v15, %v1490_v62  ;;  %v1505_v43 = vmax.f32 %v1503_v27, %v1504_v56  ;;  %v1543_v48 = vmax.f32 %v1314_v19, %v1318_v53  ;;  %v1557_v1 = vmax.f32 %v1367_v32, %v1371_v18 }
 0x41b   :  { %v1485_v58 = vrot.slane %v1484_v25, 1  ;;  %v1499_v26 = vrot.slane %v1498_v44, 1  ;;  %v1537_v63 = vrot.slane %v1536_v55, 4  ;;  %v1551_v21 = vrot.slane %v1550_v28, 4 }
 0x41c   :  { %v1492_v6 = vrot.slane %v1491_v49, 1  ;;  %v1506_v5 = vrot.slane %v1505_v43, 1  ;;  %v1544_v24 = vrot.slane %v1543_v48, 4  ;;  %v1558_v29 = vrot.slane %v1557_v1, 4 }
 0x41d   :  { %v1486_v7 = vmax.f32 %v1484_v25, %v1485_v58  ;;  %v1500_v61 = vmax.f32 %v1498_v44, %v1499_v26  ;;  %v1538_v9 = vmax.f32 %v1536_v55, %v1537_v63  ;;  %v1552_v33 = vmax.f32 %v1550_v28, %v1551_v21 }
 0x41e   :  { %v1493_v10 = vmax.f32 %v1491_v49, %v1492_v6  ;;  %v1507_v16 = vmax.f32 %v1505_v43, %v1506_v5  ;;  %v1545_v3 = vmax.f32 %v1543_v48, %v1544_v24  ;;  %v1559_v31 = vmax.f32 %v1557_v1, %v1558_v29 }
 0x41f   :  { %v1539_v34 = vrot.slane %v1538_v9, 2  ;;  %v1553_v37 = vrot.slane %v1552_v33, 2 }
 0x420   :  { %v1720_v41 = vcombine.low %v1486_v7, %v1493_v10  ;;  %v1721_v36 = vcombine.low %v1500_v61, %v1507_v16  ;;  %v1546_v12 = vrot.slane %v1545_v3, 2  ;;  %v1560_v39 = vrot.slane %v1559_v31, 2 }
 0x421   :  { %v1540_v59 = vmax.f32 %v1538_v9, %v1539_v34  ;;  %v1554_v2 = vmax.f32 %v1552_v33, %v1553_v37 }
 0x422   :  { %v1728_v51 = vrot.slane %v1720_v41, %v3167_v38  ;;  %v1735_v11 = vrot.slane %v1721_v36, %v3167_v38  ;;  %v1547_v17 = vmax.f32 %v1545_v3, %v1546_v12  ;;  %v1561_v0 = vmax.f32 %v1559_v31, %v1560_v39 }
 0x423   :  { %v1541_v54 = vrot.slane %v1540_v59, 1  ;;  %v1555_v52 = vrot.slane %v1554_v2, 1 }
 0x424   :  { %v1736_v42 = vcombine.low %v1728_v51, %v1735_v11  ;;  %v1548_v13 = vrot.slane %v1547_v17, 1  ;;  %v1562_v45 = vrot.slane %v1561_v0, 1 }
 0x425   :  { %v1542_v46 = vmax.f32 %v1540_v59, %v1541_v54  ;;  %v1556_v14 = vmax.f32 %v1554_v2, %v1555_v52 }
 0x426   :  { %v1549_v47 = vmax.f32 %v1547_v17, %v1548_v13  ;;  %v1563_v8 = vmax.f32 %v1561_v0, %v1562_v45 }
 0x428   :  { %v1754_v22 = vcombine.low %v1542_v46, %v1549_v47  ;;  %v1755_v20 = vcombine.low %v1556_v14, %v1563_v8 }
 0x42a   :  { %v1762_v15 = vrot.slane %v1754_v22, %v3167_v38  ;;  %v1769_v27 = vrot.slane %v1755_v20, %v3167_v38 }
 0x42c   :  { %v1770_v57 = vcombine.low %v1762_v15, %v1769_v27 }
 0x42e   :  { %v1790_v30 = vrot.slane %v1770_v57, 7  ;;  %v1408_v35 = vpop.f32.mrb[28].mxu0  ;;  %v1461_v50 = vpop.f32.mrb[28].mxu1 }
 0x42f   :  { %v1410_v19 = vpop.f32.mrb[29].mxu0  ;;  %v1463_v32 = vpop.f32.mrb[29].mxu1 }
 0x430   :  { %v1412_v62 = vpop.f32.mrb[30].mxu0  ;;  %v1465_v56 = vpop.f32.mrb[30].mxu1  ;;  %v1791_v40 = vsel %vm1685_vm0, %v1790_v30, %v1736_v42 }
 0x431   :  { %v1508_v4 = vmax.f32 %v1408_v35, %v1412_v62  ;;  %v1522_v25 = vmax.f32 %v1461_v50, %v1465_v56  ;;  %v1414_v44 = vpop.f32.mrb[31].mxu0  ;;  %v1467_v55 = vpop.f32.mrb[31].mxu1  ;;  %v1792_v28 = vsel %vm1687_vm1, %v1790_v30, %v1791_v40 }
 0x432   :  { %v1515_v53 = vmax.f32 %v1410_v19, %v1414_v44  ;;  %v1529_v18 = vmax.f32 %v1463_v32, %v1467_v55  ;;  %v1793_v49 = vsel %vm1689_vm2, %v1790_v30, %v1792_v28 }
 0x433   :  { %v1509_v43 = vrot.slane %v1508_v4, 4  ;;  %v1523_v48 = vrot.slane %v1522_v25, 4  ;;  %v1794_v1 = vsel %vm1691_vm3, %v1790_v30, %v1793_v49 }
 0x434   :  { %v1516_v58 = vrot.slane %v1515_v53, 4  ;;  %v1530_v26 = vrot.slane %v1529_v18, 4  ;;  %v2109_v63 = vadd.f32 %v3190_v23, %v1794_v1 }
 0x435   :  { %v1510_v21 = vmax.f32 %v1508_v4, %v1509_v43  ;;  %v1524_v6 = vmax.f32 %v1522_v25, %v1523_v48 }
 0x436   :  { %v1517_v5 = vmax.f32 %v1515_v53, %v1516_v58  ;;  %v1531_v24 = vmax.f32 %v1529_v18, %v1530_v26  ;;  %v1418_v29 = vpop.f32.mrb[32].mxu0  ;;  %v1471_v7 = vpop.f32.mrb[32].mxu1  ;;  %2111 = vst [vmem:[#allocation17] sm:$0xff] %v2109_v63 }
 0x437   :  { %v1511_v61 = vrot.slane %v1510_v21, 2  ;;  %v1525_v9 = vrot.slane %v1524_v6, 2  ;;  %v1420_v33 = vpop.f32.mrb[33].mxu0  ;;  %v1473_v10 = vpop.f32.mrb[33].mxu1 }
 0x438   :  { %v1518_v16 = vrot.slane %v1517_v5, 2  ;;  %v1532_v3 = vrot.slane %v1531_v24, 2  ;;  %v1422_v31 = vpop.f32.mrb[34].mxu0  ;;  %v1475_v34 = vpop.f32.mrb[34].mxu1 }
 0x439   :  { %v1512_v37 = vmax.f32 %v1510_v21, %v1511_v61  ;;  %v1526_v41 = vmax.f32 %v1524_v6, %v1525_v9  ;;  %v1564_v36 = vmax.f32 %v1418_v29, %v1422_v31  ;;  %v1578_v12 = vmax.f32 %v1471_v7, %v1475_v34  ;;  %v1424_v23 = vpop.f32.mrb[35].mxu0  ;;  %v1477_v39 = vpop.f32.mrb[35].mxu1 }
 0x43a   :  { %v1519_v59 = vmax.f32 %v1517_v5, %v1518_v16  ;;  %v1533_v2 = vmax.f32 %v1531_v24, %v1532_v3  ;;  %v1571_v51 = vmax.f32 %v1420_v33, %v1424_v23  ;;  %v1585_v11 = vmax.f32 %v1473_v10, %v1477_v39 }
 0x43b   :  { %v1513_v17 = vrot.slane %v1512_v37, 1  ;;  %v1527_v0 = vrot.slane %v1526_v41, 1  ;;  %v1565_v54 = vrot.slane %v1564_v36, 4  ;;  %v1579_v52 = vrot.slane %v1578_v12, 4 }
 0x43c   :  { %v1520_v42 = vrot.slane %v1519_v59, 1  ;;  %v1534_v13 = vrot.slane %v1533_v2, 1  ;;  %v1572_v45 = vrot.slane %v1571_v51, 4  ;;  %v1586_v46 = vrot.slane %v1585_v11, 4 }
 0x43d   :  { %v1514_v14 = vmax.f32 %v1512_v37, %v1513_v17  ;;  %v1528_v47 = vmax.f32 %v1526_v41, %v1527_v0  ;;  %v1566_v8 = vmax.f32 %v1564_v36, %v1565_v54  ;;  %v1580_v22 = vmax.f32 %v1578_v12, %v1579_v52 }
 0x43e   :  { %v1521_v20 = vmax.f32 %v1519_v59, %v1520_v42  ;;  %v1535_v15 = vmax.f32 %v1533_v2, %v1534_v13  ;;  %v1573_v27 = vmax.f32 %v1571_v51, %v1572_v45  ;;  %v1587_v57 = vmax.f32 %v1585_v11, %v1586_v46 }
 0x43f   :  { %v1567_v30 = vrot.slane %v1566_v8, 2  ;;  %v1581_v35 = vrot.slane %v1580_v22, 2 }
 0x440   :  { %v1737_v50 = vcombine.low %v1514_v14, %v1521_v20  ;;  %v1738_v19 = vcombine.low %v1528_v47, %v1535_v15  ;;  %v1574_v32 = vrot.slane %v1573_v27, 2  ;;  %v1588_v62 = vrot.slane %v1587_v57, 2 }
 0x441   :  { %v1568_v56 = vmax.f32 %v1566_v8, %v1567_v30  ;;  %v1582_v40 = vmax.f32 %v1580_v22, %v1581_v35 }
 0x442   :  { %v1745_v4 = vrot.slane %v1737_v50, %v3167_v38  ;;  %v1752_v25 = vrot.slane %v1738_v19, %v3167_v38  ;;  %v1575_v44 = vmax.f32 %v1573_v27, %v1574_v32  ;;  %v1589_v55 = vmax.f32 %v1587_v57, %v1588_v62 }
 0x443   :  { %v1569_v28 = vrot.slane %v1568_v56, 1  ;;  %v1583_v53 = vrot.slane %v1582_v40, 1 }
 0x444   :  { %v1753_v18 = vcombine.low %v1745_v4, %v1752_v25  ;;  %v1576_v49 = vrot.slane %v1575_v44, 1  ;;  %v1590_v43 = vrot.slane %v1589_v55, 1 }
 0x445   :  { %v1570_v48 = vmax.f32 %v1568_v56, %v1569_v28  ;;  %v1584_v1 = vmax.f32 %v1582_v40, %v1583_v53 }
 0x446   :  { %v1577_v58 = vmax.f32 %v1575_v44, %v1576_v49  ;;  %v1591_v26 = vmax.f32 %v1589_v55, %v1590_v43 }
 0x448   :  { %v1771_v63 = vcombine.low %v1570_v48, %v1577_v58  ;;  %v1772_v21 = vcombine.low %v1584_v1, %v1591_v26 }
 0x44a   :  { %v1779_v6 = vrot.slane %v1771_v63, %v3167_v38  ;;  %v1786_v5 = vrot.slane %v1772_v21, %v3167_v38 }
 0x44c   :  { %v1787_v24 = vcombine.low %v1779_v6, %v1786_v5 }
 0x44e   :  { %v1797_v29 = vrot.slane %v1787_v24, 7 }
 0x450   :  { %v1798_v7 = vsel %vm1685_vm0, %v1797_v29, %v1753_v18 }
 0x451   :  { %v1799_v61 = vsel %vm1687_vm1, %v1797_v29, %v1798_v7 }
 0x452   :  { %v1800_v9 = vsel %vm1689_vm2, %v1797_v29, %v1799_v61 }
 0x453   :  { %v1801_v33 = vsel %vm1691_vm3, %v1797_v29, %v1800_v9 }
 0x454   :  { %v2110_v10 = vadd.f32 %v3213_v60, %v1801_v33 }
 0x456   :  { %2112 = vst [vmem:[#allocation17 + $0x8] sm:$0xff] %v2110_v10 }
 0x457   :  { %2534 = shalt.err (!%p2531_p6)
}
 0x458   :  { %s2535_s21 = scalar_lea.hbm %s3308_s9, 256 }
 0x459   :  { %p2536_p7 = scmp.ne.s32.totalorder %s3308_s9, %s2535_s21  ;;  %p2539_p8 = scmp.lt.u32.totalorder %s2535_s21, %s3308_s9 }
 0x45b   :  { %p2541_p9 = pnand %p2539_p8, %p2536_p7 }
 0x45d   :  { %2544 = shalt.err (!%p2541_p9)
}
 0x45e   :  { %2132 = dma.vmem_to_hbm [thread:$0]  %s2130_s29, 256, %s3308_s9, [#allocation18]  }
 0x45f   :  { %2555 = dma.done.wait [#allocation4], 256  }
 0x460   :  { %2556 = vsyncadd [#allocation4], 4294967040 }
 0x461   :  { %2557 = dma.done.wait [#allocation18], 256  }
 0x462   :  { %2558 = vsyncadd [#allocation18], 4294967040 }
 0x463   :  { %2139 = vsyncpa [#allocation3], 1 }
 0x464   :  { %2140 = vsyncpa [#allocation6], 1 }
 0x465   :  { %2141 = vsyncpa [#allocation9], 1 }
 0x466   :  { %2142 = vsyncpa [#allocation12], 1 }
 0x467   :  { %2143 = vsyncpa [#allocation15], 1 }
 0x468   :  { %2144 = vsyncpa [#allocation4], 1 }
 0x469   :  { %2145 = vsyncpa [#allocation18], 1 }

</bundles_post_ra>
